<compile_context>
chip_gen: v6e
topology: v6e:2x2x1
jax: 0.10.0
libtpu: 0.0.40
codegen_flags: <defaults>
</compile_context>

<pallas_src>
import math

import jax
import jax.numpy as jnp
from jax.experimental import pallas as pl
from jax.experimental.pallas import tpu as pltpu


# ----------------------------- static helpers -----------------------------

def _active_taps(K, dilation, S):
    """Tap indices whose causal shift (K-1-k)*dilation is < S (non-zero contribution)."""
    return [k for k in range(K) if (K - 1 - k) * dilation < S]


def _pick_block_batch(B, S, block_batch=None):
    """Sequences per grid step. Targets ~2048 rows/step, keeps grid >= 2, M % 8 == 0."""
    g = 8 // math.gcd(S, 8)                 # Bblk*S must be a multiple of 8
    if block_batch is None:
        bb = max(1, 2048 // max(S, 1))      # amortize per-step grid overhead
        if B > 1:
            bb = min(bb, (B + 1) // 2)      # grid >= 2 so both v7x TensorCores work
        bb = min(bb, max(B, 1))
    else:
        bb = block_batch
    return max(g, (bb // g) * g)


# ------------------------------- kernel -----------------------------------

def _build_kernel(*, S, K, L, channels, Bblk):
    M = Bblk * S
    level_shifts = [
        [(K - 1 - k) * (2 ** l) for k in _active_taps(K, 2 ** l, S)]
        for l in range(L)
    ]
    distinct_shifts = sorted({s for sh in level_shifts for s in sh if s > 0})
    s_is_pow2 = (S & (S - 1)) == 0

    def kernel(*refs):
        it = iter(refs)
        x_ref = next(it)        # (M, Din)   flattened (Bblk, S) rows
        pe_ref = next(it)       # (S, P)     sinusoidal PE + proj bias
        pw_ref = next(it)       # (Din, P)
        lvl_refs = [(next(it), next(it), next(it)) for _ in range(L)]
        ln_ref = next(it)       # (2, T)     [gamma; beta]
        out_ref = next(it)      # (M, T)

        # ---- hoisted per-sequence position + causal keep-masks (computed once) ----
        pos = jax.lax.broadcasted_iota(jnp.int32, (M, 1), 0)
        pos = (pos & (S - 1)) if s_is_pow2 else (pos % S)
        keep = {s: pos >= s for s in distinct_shifts}

        def shifted_cat(a, shifts):
            # Concatenate causally-shifted copies of `a` along lanes; zero rows whose
            # in-sequence position < shift (no leakage across sequence boundaries).
            pieces = []
            for s in shifts:
                if s == 0:
                    pieces.append(a)
                else:
                    r = pltpu.roll(a, shift=s, axis=0)
                    pieces.append(jnp.where(keep[s], r, 0.0))
            return pieces[0] if len(pieces) == 1 else jnp.concatenate(pieces, axis=-1)

        # ---- input projection + positional encoding (proj bias folded into pe) ----
        h = jnp.dot(x_ref[...], pw_ref[...], preferred_element_type=jnp.float32)
        P = h.shape[-1]
        h = (h.reshape(Bblk, S, P) + pe_ref[...][None]).reshape(M, P)

        # ---- TCN blocks ----
        for l in range(L):
            cin, cout = channels[l], channels[l + 1]
            shifts = level_shifts[l]
            w1, w2, bias = lvl_refs[l]
            folded_ds = cin != cout        # downsample columns appended to w1

            # conv1 (+ folded 1x1 downsample) as one matmul
            z1 = jnp.dot(shifted_cat(h, shifts), w1[...],
                         preferred_element_type=jnp.float32)
            if folded_ds:
                h1 = jnp.maximum(z1[:, :cout] + bias[0:1, :], 0.0)
                res = z1[:, cout:2 * cout] + bias[2:3, :]
            else:
                h1 = jnp.maximum(z1 + bias[0:1, :], 0.0)
                res = h

            # conv2 as one matmul
            z2 = jnp.dot(shifted_cat(h1, shifts), w2[...],
                         preferred_element_type=jnp.float32)
            h2 = jnp.maximum(z2 + bias[1:2, :], 0.0)
            h = jnp.maximum(h2 + res, 0.0)

        # ---- final LayerNorm over the channel dim ----
        mean = jnp.mean(h, axis=-1, keepdims=True)
        var = jnp.mean(jnp.square(h - mean), axis=-1, keepdims=True)
        y = (h - mean) * jax.lax.rsqrt(var + 1e-5)
        out_ref[...] = (y * ln_ref[0:1, :] + ln_ref[1:2, :]).astype(out_ref.dtype)

    return kernel


# ------------------------------- wrapper -----------------------------------

def per_sensor_encoder_tcn(x, params, cfg, block_batch=None):
    B, S, Din = x.shape
    P = cfg["proj_dim"]
    T = cfg["tcn_out_dim"]
    K = cfg["kernel_size"]
    L = cfg["num_levels"]
    channels = [P] + [T] * L

    Bblk = _pick_block_batch(B, S, block_batch)
    Bp = -(-B // Bblk) * Bblk
    if Bp != B:
        x = jnp.concatenate([x, jnp.zeros((Bp - B, S, Din), x.dtype)], axis=0)
    x_flat = x.reshape(Bp * S, Din)
    M = Bblk * S

    # ---- wrapper-side parameter packing / consolidation (plain XLA, done once) ----
    pe = params["pe"][:S] + params["proj_b"]                          # (S, P)
    ln = jnp.concatenate([params["ln_g"], params["ln_b"]], axis=0)    # (2, T)

    total_w_elems = pe.size + params["proj_w"].size + ln.size
    mm_flops_per_row = 2 * Din * P

    level_pack = []
    for l in range(L):
        cin, cout = channels[l], channels[l + 1]
        taps = _active_taps(K, 2 ** l, S)
        A = len(taps)
        lvl = params["levels"][l]
        w1 = jnp.concatenate([lvl["c1w"][k] for k in taps], axis=0)   # (A*cin, cout)
        w2 = jnp.concatenate([lvl["c2w"][k] for k in taps], axis=0)   # (A*cout, cout)
        if cin != cout:
            # Fold the 1x1 downsample into conv1's shift-0 (last) tap block.
            ds_cols = jnp.concatenate(
                [jnp.zeros(((A - 1) * cin, cout), jnp.float32), lvl["dw"]], axis=0)
            w1 = jnp.concatenate([w1, ds_cols], axis=1)               # (A*cin, 2*cout)
            db = lvl["db"]
        else:
            db = jnp.zeros((1, cout), jnp.float32)
        bias = jnp.concatenate([lvl["c1b"], lvl["c2b"], db], axis=0)  # (3, cout)
        level_pack.append((w1, w2, bias))
        total_w_elems += w1.size + w2.size + bias.size
        mm_flops_per_row += 2 * (A * cin * w1.shape[1] + A * cout * cout)

    inputs = [x_flat, pe, params["proj_w"]]
    in_specs = [
        pl.BlockSpec((M, Din), lambda b: (b, 0)),
        pl.BlockSpec((S, P), lambda b: (0, 0)),
        pl.BlockSpec((Din, P), lambda b: (0, 0)),
    ]
    for (w1, w2, bias) in level_pack:
        inputs += [w1, w2, bias]
        in_specs += [
            pl.BlockSpec(w1.shape, lambda b: (0, 0)),
            pl.BlockSpec(w2.shape, lambda b: (0, 0)),
            pl.BlockSpec(bias.shape, lambda b: (0, 0)),
        ]
    inputs.append(ln)
    in_specs.append(pl.BlockSpec(ln.shape, lambda b: (0, 0)))

    rows = Bp * S
    cost = pl.CostEstimate(
        flops=rows * mm_flops_per_row,
        transcendentals=rows,                     # rsqrt in the final LayerNorm
        bytes_accessed=4 * (rows * (Din + T) + total_w_elems),
    )

    kernel = _build_kernel(S=S, K=K, L=L, channels=channels, Bblk=Bblk)

    out_flat = pl.pallas_call(
        kernel,
        out_shape=jax.ShapeDtypeStruct((Bp * S, T), jnp.float32),
        grid=(Bp // Bblk,),
        in_specs=in_specs,
        out_specs=pl.BlockSpec((M, T), lambda b: (b, 0)),
        compiler_params=pltpu.CompilerParams(dimension_semantics=("parallel",)),
        cost_estimate=cost,
    )(*inputs)

    return out_flat.reshape(Bp, S, T)[:B]


# -------------------------- pure-JAX reference ----------------------------

def reference_forward(x, params, cfg):
    K = cfg["kernel_size"]
    num_levels = cfg["num_levels"]
    channels = [cfg["proj_dim"]] + [cfg["tcn_out_dim"]] * num_levels

    h = x @ params["proj_w"] + params["proj_b"]          # (B,S,P)
    h = h + params["pe"][None]

    def causal_conv(a, w, b, d):
        B, S, Cin = a.shape
        Kk = w.shape[0]
        out = jnp.zeros((B, S, w.shape[2]), jnp.float32)
        for k in range(Kk):
            s = (Kk - 1 - k) * d
            sh = jnp.pad(a, ((0, 0), (s, 0), (0, 0)))[:, :S, :]
            out = out + sh @ w[k]
        return out + b

    for l in range(num_levels):
        d = 2 ** l
        lvl = params["levels"][l]
        res_in = h
        h1 = jnp.maximum(causal_conv(h, lvl["c1w"], lvl["c1b"], d), 0.0)
        h2 = jnp.maximum(causal_conv(h1, lvl["c2w"], lvl["c2b"], d), 0.0)
        if channels[l] != channels[l + 1]:
            res = res_in @ lvl["dw"] + lvl["db"]
        else:
            res = res_in
        h = jnp.maximum(h2 + res, 0.0)

    mean = jnp.mean(h, axis=-1, keepdims=True)
    var = jnp.mean((h - mean) ** 2, axis=-1, keepdims=True)
    hn = (h - mean) * jax.lax.rsqrt(var + 1e-5)
    return hn * params["ln_g"] + params["ln_b"]


# ------------------------------- setup -------------------------------------

def make_positional_encoding(seq_len, d_model):
    position = jnp.arange(seq_len, dtype=jnp.float32)[:, None]
    div_term = jnp.exp(jnp.arange(0, d_model, 2, dtype=jnp.float32)
                       * (-math.log(10000.0) / d_model))
    pe = jnp.zeros((seq_len, d_model), jnp.float32)
    pe = pe.at[:, 0::2].set(jnp.sin(position * div_term))
    pe = pe.at[:, 1::2].set(jnp.cos(position * div_term))
    return pe


def init_params(key, cfg):
    Din, P, T = cfg["input_dim"], cfg["proj_dim"], cfg["tcn_out_dim"]
    K, num_levels, S = cfg["kernel_size"], cfg["num_levels"], cfg["seq_len"]
    channels = [P] + [T] * num_levels

    def nrm(k, shape, scale=0.1):
        return scale * jax.random.normal(k, shape, jnp.float32)

    keys = jax.random.split(key, 4 + 8 * num_levels)
    ki = iter(keys)
    params = {
        "pe": make_positional_encoding(S, P),
        "proj_w": nrm(next(ki), (Din, P)),
        "proj_b": nrm(next(ki), (1, P)),
        "ln_g": 1.0 + nrm(next(ki), (1, T), 0.05),
        "ln_b": nrm(next(ki), (1, T), 0.05),
        "levels": [],
    }
    for l in range(num_levels):
        cin, cout = channels[l], channels[l + 1]
        lvl = {
            "c1w": nrm(next(ki), (K, cin, cout)),
            "c1b": nrm(next(ki), (1, cout)),
            "c2w": nrm(next(ki), (K, cout, cout)),
            "c2b": nrm(next(ki), (1, cout)),
        }
        if cin != cout:
            lvl["dw"] = nrm(next(ki), (cin, cout))
            lvl["db"] = nrm(next(ki), (1, cout))
        params["levels"].append(lvl)
    return params


if __name__ == "__main__":
    cfg = dict(
        input_dim=8,
        proj_dim=16,
        tcn_out_dim=32,
        seq_len=16,
        num_levels=2,
        kernel_size=3,
        dropout=0.1,   # identity at inference
    )
    B = 16  # auto block_batch -> 8 sequences/step (128 rows), grid = 2 ("parallel")

    key = jax.random.PRNGKey(0)
    kx, kp = jax.random.split(key)
    x = jax.random.normal(kx, (B, cfg["seq_len"], cfg["input_dim"]), jnp.float32)
    params = init_params(kp, cfg)

    out = per_sensor_encoder_tcn(x, params, cfg)
    out = jax.block_until_ready(out)

    ref = reference_forward(x, params, cfg)
    assert out.shape == (B, cfg["seq_len"], cfg["tcn_out_dim"])
    assert jnp.allclose(out, ref, rtol=1e-4, atol=1e-4), (
        float(jnp.max(jnp.abs(out - ref))))

    print("KERNEL_OK")
</pallas_src>

<mosaic_0001>
module attributes {stable_mosaic.version = 11 : i64} {
  func.func @kernel(%arg0: i32, %arg1: memref<128x8xf32, #tpu.memory_space<vmem>>, %arg2: memref<16x16xf32, #tpu.memory_space<vmem>>, %arg3: memref<8x16xf32, #tpu.memory_space<vmem>>, %arg4: memref<48x64xf32, #tpu.memory_space<vmem>>, %arg5: memref<96x32xf32, #tpu.memory_space<vmem>>, %arg6: memref<3x32xf32, #tpu.memory_space<vmem>>, %arg7: memref<96x32xf32, #tpu.memory_space<vmem>>, %arg8: memref<96x32xf32, #tpu.memory_space<vmem>>, %arg9: memref<3x32xf32, #tpu.memory_space<vmem>>, %arg10: memref<2x32xf32, #tpu.memory_space<vmem>>, %arg11: memref<128x32xf32, #tpu.memory_space<vmem>>) attributes {dimension_semantics = [#tpu.dimension_semantics<parallel>], iteration_bounds = array<i64: 2>, scalar_prefetch = 0 : i64, scratch_operands = 0 : i64, tpu.core_type = #tpu.core_type<tc>, window_params = [{transform_indices = @transform_0, window_bounds = array<i64: 128, 8>}, {pipeline_mode = #tpu.pipeline_mode<synchronous>, transform_indices = @transform_1, window_bounds = array<i64: 16, 16>}, {pipeline_mode = #tpu.pipeline_mode<synchronous>, transform_indices = @transform_2, window_bounds = array<i64: 8, 16>}, {pipeline_mode = #tpu.pipeline_mode<synchronous>, transform_indices = @transform_3, window_bounds = array<i64: 48, 64>}, {pipeline_mode = #tpu.pipeline_mode<synchronous>, transform_indices = @transform_4, window_bounds = array<i64: 96, 32>}, {pipeline_mode = #tpu.pipeline_mode<synchronous>, transform_indices = @transform_5, window_bounds = array<i64: 3, 32>}, {pipeline_mode = #tpu.pipeline_mode<synchronous>, transform_indices = @transform_6, window_bounds = array<i64: 96, 32>}, {pipeline_mode = #tpu.pipeline_mode<synchronous>, transform_indices = @transform_7, window_bounds = array<i64: 96, 32>}, {pipeline_mode = #tpu.pipeline_mode<synchronous>, transform_indices = @transform_8, window_bounds = array<i64: 3, 32>}, {pipeline_mode = #tpu.pipeline_mode<synchronous>, transform_indices = @transform_9, window_bounds = array<i64: 2, 32>}, {transform_indices = @transform_10, window_bounds = array<i64: 128, 32>}]} {
    %0 = tpu.iota {dimensions = array<i32: 0>} : vector<128x1xi32>
    %c15_i32 = arith.constant 15 : i32
    %1 = vector.broadcast %c15_i32 : i32 to vector<128x1xi32>
    %2 = arith.andi %0, %1 : vector<128x1xi32>
    %c1_i32 = arith.constant 1 : i32
    %3 = vector.broadcast %c1_i32 : i32 to vector<128x1xi32>
    %4 = arith.cmpi sge, %2, %3 : vector<128x1xi32>
    %c2_i32 = arith.constant 2 : i32
    %5 = vector.broadcast %c2_i32 : i32 to vector<128x1xi32>
    %6 = arith.cmpi sge, %2, %5 : vector<128x1xi32>
    %c4_i32 = arith.constant 4 : i32
    %7 = vector.broadcast %c4_i32 : i32 to vector<128x1xi32>
    %8 = arith.cmpi sge, %2, %7 : vector<128x1xi32>
    %c0 = arith.constant 0 : index
    %c0_0 = arith.constant 0 : index
    %9 = vector.load %arg1[%c0, %c0_0] : memref<128x8xf32, #tpu.memory_space<vmem>>, vector<128x8xf32>
    %c0_1 = arith.constant 0 : index
    %c0_2 = arith.constant 0 : index
    %10 = vector.load %arg3[%c0_1, %c0_2] : memref<8x16xf32, #tpu.memory_space<vmem>>, vector<8x16xf32>
    %cst = arith.constant dense<0.000000e+00> : vector<128x16xf32>
    %11 = tpu.matmul %9, %10, %cst {dimension_numbers = #tpu.dot_dimension_numbers<[1], [0], [0], [1], [0, 0, 1, 1], [], []>} : vector<128x8xf32>, vector<8x16xf32>, vector<128x16xf32> -> vector<128x16xf32>
    %12 = vector.shape_cast %11 : vector<128x16xf32> to vector<8x16x16xf32>
    %c0_3 = arith.constant 0 : index
    %c0_4 = arith.constant 0 : index
    %13 = vector.load %arg2[%c0_3, %c0_4] : memref<16x16xf32, #tpu.memory_space<vmem>>, vector<16x16xf32>
    %14 = vector.shape_cast %13 : vector<16x16xf32> to vector<1x16x16xf32>
    %15 = vector.broadcast %14 : vector<1x16x16xf32> to vector<8x16x16xf32>
    %16 = arith.addf %12, %15 : vector<8x16x16xf32>
    %17 = vector.shape_cast %16 : vector<8x16x16xf32> to vector<128x16xf32>
    %c2_i32_5 = arith.constant 2 : i32
    %18 = tpu.dynamic_rotate %17 by %c2_i32_5 dim 0 : vector<128x16xf32>, i32 -> vector<128x16xf32>
    %cst_6 = arith.constant 0.000000e+00 : f32
    %19 = vector.shape_cast %6 : vector<128x1xi1> to vector<128x1xi1>
    %20 = vector.broadcast %19 : vector<128x1xi1> to vector<128x16xi1>
    %21 = vector.broadcast %cst_6 : f32 to vector<128x16xf32>
    %22 = arith.select %20, %18, %21 : vector<128x16xi1>, vector<128x16xf32>
    %c1_i32_7 = arith.constant 1 : i32
    %23 = tpu.dynamic_rotate %17 by %c1_i32_7 dim 0 : vector<128x16xf32>, i32 -> vector<128x16xf32>
    %cst_8 = arith.constant 0.000000e+00 : f32
    %24 = vector.shape_cast %4 : vector<128x1xi1> to vector<128x1xi1>
    %25 = vector.broadcast %24 : vector<128x1xi1> to vector<128x16xi1>
    %26 = vector.broadcast %cst_8 : f32 to vector<128x16xf32>
    %27 = arith.select %25, %23, %26 : vector<128x16xi1>, vector<128x16xf32>
    %28 = tpu.concatenate %22, %27, %17 in 1 : vector<128x16xf32>, vector<128x16xf32>, vector<128x16xf32> -> vector<128x48xf32>
    %c0_9 = arith.constant 0 : index
    %c0_10 = arith.constant 0 : index
    %29 = vector.load %arg4[%c0_9, %c0_10] : memref<48x64xf32, #tpu.memory_space<vmem>>, vector<48x64xf32>
    %cst_11 = arith.constant dense<0.000000e+00> : vector<128x64xf32>
    %30 = tpu.matmul %28, %29, %cst_11 {dimension_numbers = #tpu.dot_dimension_numbers<[1], [0], [0], [1], [0, 0, 1, 1], [], []>} : vector<128x48xf32>, vector<48x64xf32>, vector<128x64xf32> -> vector<128x64xf32>
    %31 = vector.extract_strided_slice %30 {offsets = [0, 0], sizes = [128, 32], strides = [1, 1]} : vector<128x64xf32> to vector<128x32xf32>
    %c0_12 = arith.constant 0 : index
    %c0_13 = arith.constant 0 : index
    %32 = vector.load %arg6[%c0_12, %c0_13] : memref<3x32xf32, #tpu.memory_space<vmem>>, vector<1x32xf32>
    %33 = vector.broadcast %32 : vector<1x32xf32> to vector<128x32xf32>
    %34 = arith.addf %31, %33 : vector<128x32xf32>
    %cst_14 = arith.constant 0.000000e+00 : f32
    %35 = vector.broadcast %cst_14 : f32 to vector<128x32xf32>
    %36 = arith.maximumf %34, %35 : vector<128x32xf32>
    %37 = vector.extract_strided_slice %30 {offsets = [0, 32], sizes = [128, 32], strides = [1, 1]} : vector<128x64xf32> to vector<128x32xf32>
    %c2 = arith.constant 2 : index
    %c0_15 = arith.constant 0 : index
    %38 = vector.load %arg6[%c2, %c0_15] : memref<3x32xf32, #tpu.memory_space<vmem>>, vector<1x32xf32>
    %39 = vector.broadcast %38 : vector<1x32xf32> to vector<128x32xf32>
    %40 = arith.addf %37, %39 : vector<128x32xf32>
    %c2_i32_16 = arith.constant 2 : i32
    %41 = tpu.dynamic_rotate %36 by %c2_i32_16 dim 0 : vector<128x32xf32>, i32 -> vector<128x32xf32>
    %cst_17 = arith.constant 0.000000e+00 : f32
    %42 = vector.shape_cast %6 : vector<128x1xi1> to vector<128x1xi1>
    %43 = vector.broadcast %42 : vector<128x1xi1> to vector<128x32xi1>
    %44 = vector.broadcast %cst_17 : f32 to vector<128x32xf32>
    %45 = arith.select %43, %41, %44 : vector<128x32xi1>, vector<128x32xf32>
    %c1_i32_18 = arith.constant 1 : i32
    %46 = tpu.dynamic_rotate %36 by %c1_i32_18 dim 0 : vector<128x32xf32>, i32 -> vector<128x32xf32>
    %cst_19 = arith.constant 0.000000e+00 : f32
    %47 = vector.shape_cast %4 : vector<128x1xi1> to vector<128x1xi1>
    %48 = vector.broadcast %47 : vector<128x1xi1> to vector<128x32xi1>
    %49 = vector.broadcast %cst_19 : f32 to vector<128x32xf32>
    %50 = arith.select %48, %46, %49 : vector<128x32xi1>, vector<128x32xf32>
    %51 = tpu.concatenate %45, %50, %36 in 1 : vector<128x32xf32>, vector<128x32xf32>, vector<128x32xf32> -> vector<128x96xf32>
    %c0_20 = arith.constant 0 : index
    %c0_21 = arith.constant 0 : index
    %52 = vector.load %arg5[%c0_20, %c0_21] : memref<96x32xf32, #tpu.memory_space<vmem>>, vector<96x32xf32>
    %cst_22 = arith.constant dense<0.000000e+00> : vector<128x32xf32>
    %53 = tpu.matmul %51, %52, %cst_22 {dimension_numbers = #tpu.dot_dimension_numbers<[1], [0], [0], [1], [0, 0, 1, 1], [], []>} : vector<128x96xf32>, vector<96x32xf32>, vector<128x32xf32> -> vector<128x32xf32>
    %c1 = arith.constant 1 : index
    %c0_23 = arith.constant 0 : index
    %54 = vector.load %arg6[%c1, %c0_23] : memref<3x32xf32, #tpu.memory_space<vmem>>, vector<1x32xf32>
    %55 = vector.broadcast %54 : vector<1x32xf32> to vector<128x32xf32>
    %56 = arith.addf %53, %55 : vector<128x32xf32>
    %cst_24 = arith.constant 0.000000e+00 : f32
    %57 = vector.broadcast %cst_24 : f32 to vector<128x32xf32>
    %58 = arith.maximumf %56, %57 : vector<128x32xf32>
    %59 = arith.addf %58, %40 : vector<128x32xf32>
    %cst_25 = arith.constant 0.000000e+00 : f32
    %60 = vector.broadcast %cst_25 : f32 to vector<128x32xf32>
    %61 = arith.maximumf %59, %60 : vector<128x32xf32>
    %c4_i32_26 = arith.constant 4 : i32
    %62 = tpu.dynamic_rotate %61 by %c4_i32_26 dim 0 : vector<128x32xf32>, i32 -> vector<128x32xf32>
    %cst_27 = arith.constant 0.000000e+00 : f32
    %63 = vector.shape_cast %8 : vector<128x1xi1> to vector<128x1xi1>
    %64 = vector.broadcast %63 : vector<128x1xi1> to vector<128x32xi1>
    %65 = vector.broadcast %cst_27 : f32 to vector<128x32xf32>
    %66 = arith.select %64, %62, %65 : vector<128x32xi1>, vector<128x32xf32>
    %c2_i32_28 = arith.constant 2 : i32
    %67 = tpu.dynamic_rotate %61 by %c2_i32_28 dim 0 : vector<128x32xf32>, i32 -> vector<128x32xf32>
    %cst_29 = arith.constant 0.000000e+00 : f32
    %68 = vector.shape_cast %6 : vector<128x1xi1> to vector<128x1xi1>
    %69 = vector.broadcast %68 : vector<128x1xi1> to vector<128x32xi1>
    %70 = vector.broadcast %cst_29 : f32 to vector<128x32xf32>
    %71 = arith.select %69, %67, %70 : vector<128x32xi1>, vector<128x32xf32>
    %72 = tpu.concatenate %66, %71, %61 in 1 : vector<128x32xf32>, vector<128x32xf32>, vector<128x32xf32> -> vector<128x96xf32>
    %c0_30 = arith.constant 0 : index
    %c0_31 = arith.constant 0 : index
    %73 = vector.load %arg7[%c0_30, %c0_31] : memref<96x32xf32, #tpu.memory_space<vmem>>, vector<96x32xf32>
    %cst_32 = arith.constant dense<0.000000e+00> : vector<128x32xf32>
    %74 = tpu.matmul %72, %73, %cst_32 {dimension_numbers = #tpu.dot_dimension_numbers<[1], [0], [0], [1], [0, 0, 1, 1], [], []>} : vector<128x96xf32>, vector<96x32xf32>, vector<128x32xf32> -> vector<128x32xf32>
    %c0_33 = arith.constant 0 : index
    %c0_34 = arith.constant 0 : index
    %75 = vector.load %arg9[%c0_33, %c0_34] : memref<3x32xf32, #tpu.memory_space<vmem>>, vector<1x32xf32>
    %76 = vector.broadcast %75 : vector<1x32xf32> to vector<128x32xf32>
    %77 = arith.addf %74, %76 : vector<128x32xf32>
    %cst_35 = arith.constant 0.000000e+00 : f32
    %78 = vector.broadcast %cst_35 : f32 to vector<128x32xf32>
    %79 = arith.maximumf %77, %78 : vector<128x32xf32>
    %c4_i32_36 = arith.constant 4 : i32
    %80 = tpu.dynamic_rotate %79 by %c4_i32_36 dim 0 : vector<128x32xf32>, i32 -> vector<128x32xf32>
    %cst_37 = arith.constant 0.000000e+00 : f32
    %81 = vector.shape_cast %8 : vector<128x1xi1> to vector<128x1xi1>
    %82 = vector.broadcast %81 : vector<128x1xi1> to vector<128x32xi1>
    %83 = vector.broadcast %cst_37 : f32 to vector<128x32xf32>
    %84 = arith.select %82, %80, %83 : vector<128x32xi1>, vector<128x32xf32>
    %c2_i32_38 = arith.constant 2 : i32
    %85 = tpu.dynamic_rotate %79 by %c2_i32_38 dim 0 : vector<128x32xf32>, i32 -> vector<128x32xf32>
    %cst_39 = arith.constant 0.000000e+00 : f32
    %86 = vector.shape_cast %6 : vector<128x1xi1> to vector<128x1xi1>
    %87 = vector.broadcast %86 : vector<128x1xi1> to vector<128x32xi1>
    %88 = vector.broadcast %cst_39 : f32 to vector<128x32xf32>
    %89 = arith.select %87, %85, %88 : vector<128x32xi1>, vector<128x32xf32>
    %90 = tpu.concatenate %84, %89, %79 in 1 : vector<128x32xf32>, vector<128x32xf32>, vector<128x32xf32> -> vector<128x96xf32>
    %c0_40 = arith.constant 0 : index
    %c0_41 = arith.constant 0 : index
    %91 = vector.load %arg8[%c0_40, %c0_41] : memref<96x32xf32, #tpu.memory_space<vmem>>, vector<96x32xf32>
    %cst_42 = arith.constant dense<0.000000e+00> : vector<128x32xf32>
    %92 = tpu.matmul %90, %91, %cst_42 {dimension_numbers = #tpu.dot_dimension_numbers<[1], [0], [0], [1], [0, 0, 1, 1], [], []>} : vector<128x96xf32>, vector<96x32xf32>, vector<128x32xf32> -> vector<128x32xf32>
    %c1_43 = arith.constant 1 : index
    %c0_44 = arith.constant 0 : index
    %93 = vector.load %arg9[%c1_43, %c0_44] : memref<3x32xf32, #tpu.memory_space<vmem>>, vector<1x32xf32>
    %94 = vector.broadcast %93 : vector<1x32xf32> to vector<128x32xf32>
    %95 = arith.addf %92, %94 : vector<128x32xf32>
    %cst_45 = arith.constant 0.000000e+00 : f32
    %96 = vector.broadcast %cst_45 : f32 to vector<128x32xf32>
    %97 = arith.maximumf %95, %96 : vector<128x32xf32>
    %98 = arith.addf %97, %61 : vector<128x32xf32>
    %cst_46 = arith.constant 0.000000e+00 : f32
    %99 = vector.broadcast %cst_46 : f32 to vector<128x32xf32>
    %100 = arith.maximumf %98, %99 : vector<128x32xf32>
    %cst_47 = arith.constant dense<0.000000e+00> : vector<128xf32>
    %101 = vector.multi_reduction <add>, %100, %cst_47 [1] : vector<128x32xf32> to vector<128xf32>
    %102 = vector.shape_cast %101 : vector<128xf32> to vector<128x1xf32>
    %cst_48 = arith.constant 3.200000e+01 : f32
    %103 = vector.broadcast %cst_48 : f32 to vector<128x1xf32>
    %104 = arith.divf %102, %103 : vector<128x1xf32>
    %105 = vector.broadcast %104 : vector<128x1xf32> to vector<128x32xf32>
    %106 = arith.subf %100, %105 : vector<128x32xf32>
    %107 = arith.mulf %106, %106 : vector<128x32xf32>
    %cst_49 = arith.constant dense<0.000000e+00> : vector<128xf32>
    %108 = vector.multi_reduction <add>, %107, %cst_49 [1] : vector<128x32xf32> to vector<128xf32>
    %109 = vector.shape_cast %108 : vector<128xf32> to vector<128x1xf32>
    %cst_50 = arith.constant 3.200000e+01 : f32
    %110 = vector.broadcast %cst_50 : f32 to vector<128x1xf32>
    %111 = arith.divf %109, %110 : vector<128x1xf32>
    %112 = vector.broadcast %104 : vector<128x1xf32> to vector<128x32xf32>
    %113 = arith.subf %100, %112 : vector<128x32xf32>
    %cst_51 = arith.constant 9.99999974E-6 : f32
    %114 = vector.broadcast %cst_51 : f32 to vector<128x1xf32>
    %115 = arith.addf %111, %114 : vector<128x1xf32>
    %116 = math.rsqrt %115 : vector<128x1xf32>
    %117 = vector.broadcast %116 : vector<128x1xf32> to vector<128x32xf32>
    %118 = arith.mulf %113, %117 : vector<128x32xf32>
    %c0_52 = arith.constant 0 : index
    %c0_53 = arith.constant 0 : index
    %119 = vector.load %arg10[%c0_52, %c0_53] : memref<2x32xf32, #tpu.memory_space<vmem>>, vector<1x32xf32>
    %120 = vector.broadcast %119 : vector<1x32xf32> to vector<128x32xf32>
    %121 = arith.mulf %118, %120 : vector<128x32xf32>
    %c1_54 = arith.constant 1 : index
    %c0_55 = arith.constant 0 : index
    %122 = vector.load %arg10[%c1_54, %c0_55] : memref<2x32xf32, #tpu.memory_space<vmem>>, vector<1x32xf32>
    %123 = vector.broadcast %122 : vector<1x32xf32> to vector<128x32xf32>
    %124 = arith.addf %121, %123 : vector<128x32xf32>
    %c0_56 = arith.constant 0 : index
    %c0_57 = arith.constant 0 : index
    %125 = vector.load %arg11[%c0_56, %c0_57] : memref<128x32xf32, #tpu.memory_space<vmem>>, vector<128x32xf32>
    tpu.vector_store %arg11[%c0_56, %c0_57], %124 {strides = array<i32>} : memref<128x32xf32, #tpu.memory_space<vmem>>, vector<128x32xf32>,
    return
  }
  func.func @transform_0(%arg0: i32) -> (i32, i32) {
    %c0_i32 = arith.constant 0 : i32
    %c0_i32_0 = arith.constant 0 : i32
    return %arg0, %c0_i32 : i32, i32
  }
  func.func @transform_1(%arg0: i32) -> (i32, i32) {
    %c0_i32 = arith.constant 0 : i32
    %c0_i32_0 = arith.constant 0 : i32
    %c0_i32_1 = arith.constant 0 : i32
    return %c0_i32, %c0_i32_0 : i32, i32
  }
  func.func @transform_2(%arg0: i32) -> (i32, i32) {
    %c0_i32 = arith.constant 0 : i32
    %c0_i32_0 = arith.constant 0 : i32
    %c0_i32_1 = arith.constant 0 : i32
    return %c0_i32, %c0_i32_0 : i32, i32
  }
  func.func @transform_3(%arg0: i32) -> (i32, i32) {
    %c0_i32 = arith.constant 0 : i32
    %c0_i32_0 = arith.constant 0 : i32
    %c0_i32_1 = arith.constant 0 : i32
    return %c0_i32, %c0_i32_0 : i32, i32
  }
  func.func @transform_4(%arg0: i32) -> (i32, i32) {
    %c0_i32 = arith.constant 0 : i32
    %c0_i32_0 = arith.constant 0 : i32
    %c0_i32_1 = arith.constant 0 : i32
    return %c0_i32, %c0_i32_0 : i32, i32
  }
  func.func @transform_5(%arg0: i32) -> (i32, i32) {
    %c0_i32 = arith.constant 0 : i32
    %c0_i32_0 = arith.constant 0 : i32
    %c0_i32_1 = arith.constant 0 : i32
    return %c0_i32, %c0_i32_0 : i32, i32
  }
  func.func @transform_6(%arg0: i32) -> (i32, i32) {
    %c0_i32 = arith.constant 0 : i32
    %c0_i32_0 = arith.constant 0 : i32
    %c0_i32_1 = arith.constant 0 : i32
    return %c0_i32, %c0_i32_0 : i32, i32
  }
  func.func @transform_7(%arg0: i32) -> (i32, i32) {
    %c0_i32 = arith.constant 0 : i32
    %c0_i32_0 = arith.constant 0 : i32
    %c0_i32_1 = arith.constant 0 : i32
    return %c0_i32, %c0_i32_0 : i32, i32
  }
  func.func @transform_8(%arg0: i32) -> (i32, i32) {
    %c0_i32 = arith.constant 0 : i32
    %c0_i32_0 = arith.constant 0 : i32
    %c0_i32_1 = arith.constant 0 : i32
    return %c0_i32, %c0_i32_0 : i32, i32
  }
  func.func @transform_9(%arg0: i32) -> (i32, i32) {
    %c0_i32 = arith.constant 0 : i32
    %c0_i32_0 = arith.constant 0 : i32
    %c0_i32_1 = arith.constant 0 : i32
    return %c0_i32, %c0_i32_0 : i32, i32
  }
  func.func @transform_10(%arg0: i32) -> (i32, i32) {
    %c0_i32 = arith.constant 0 : i32
    %c0_i32_0 = arith.constant 0 : i32
    return %arg0, %c0_i32 : i32, i32
  }
}

</mosaic_0001>

<bundles_post_ra>
// kernel: tpu_custom_call.1
= control target key start
LH: loop header
LB: loop body
LE: loop exit
PB: predicated region body
PF: predicated region fallthrough
CT: control target
= control target key end

     0   :  { %s3755_s13 = smov 0   ;;  %s5622_s0 = inlined_call_operand.vmem [shape: f32[256,8], index: 0, kind: input, shape index: {}]   ;;  %s5623_s1 = inlined_call_operand.vmem [shape: f32[16,16], index: 1, kind: input, shape index: {}]   ;;  %s5624_s2 = inlined_call_operand.vmem [shape: f32[8,16], index: 2, kind: input, shape index: {}]   ;;  %s5625_s3 = inlined_call_operand.vmem [shape: f32[48,64], index: 3, kind: input, shape index: {}]   ;;  %s5626_s4 = inlined_call_operand.vmem [shape: f32[96,32], index: 4, kind: input, shape index: {}]   ;;  %s5627_s5 = inlined_call_operand.vmem [shape: f32[3,32], index: 5, kind: input, shape index: {}]   ;;  %s5628_s6 = inlined_call_operand.vmem [shape: f32[96,32], index: 6, kind: input, shape index: {}]   ;;  %s5629_s7 = inlined_call_operand.vmem [shape: f32[96,32], index: 7, kind: input, shape index: {}]   ;;  %s5630_s8 = inlined_call_operand.vmem [shape: f32[3,32], index: 8, kind: input, shape index: {}]   ;;  %s5631_s9 = inlined_call_operand.vmem [shape: f32[2,32], index: 9, kind: input, shape index: {}]   ;;  %s5632_s10 = inlined_call_operand.vmem [shape: f32[256,32], index: 10, kind: output, shape index: {}]  }
   0x1 LB: > { %s3191_s14 = sadd.s32 4294967295, %s3694_s13   ;;  %p3195_p0 = scmp.ge.s32.totalorder %s3694_s13, 1  ;;  %s3694_s13 = sphi %s3755_s13, %s20_s13  }
   0x2   : > { %p313_p1 = scmp.lt.s32.totalorder %s3694_s13, 3 }
   0x4   : > { %p314_p2 = pnand %p3195_p0, %p313_p1 }
   0x6   : > { %317 = sbr.rel (%p314_p2) target bundleno = 1961 (0x7a9), region = 60 }
   0xb   : > { %v460_v0 = vld [vmem:[%s5624_s2] sm:$0xff]  ;;  %s3196_s17 = sshll.u32 %s3191_s14, 4  ;;  %vm461_vm0 = vcmask 64512   ;;  %v1002_v17 = vld [vmem:[%s5625_s3 + $0x28] sm:$0xff]  ;;  %v363_v18 = vlaneseq  ;;  %v1000_v20 = vld [vmem:[%s5625_s3 + $0x18] sm:$0xff]  ;;  %s3696_s19 = smov 32  }
   0xc   : > { %3412 = vmatprep.subr.mxu0 %v460_v0  ;;  %3618 = vmatprep.subr.mxu1 %v460_v0  ;;  %p352_p3 = scmp.lt.s32.totalorder %s3196_s17, 31  ;;  %v1001_v19 = vld [vmem:[%s5625_s3 + $0x20] sm:$0xff]  ;;  %v3820_v21 = vld [vmem:[%s5623_s1 + $0x8] sm:$0xff]  ;;  %v999_v22 = vld [vmem:[%s5625_s3 + $0x10] sm:$0xff]  ;;  %s3697_s22 = smov 16   ;;  %vm963_vm11 = vcmask 130048  }
   0xd   : > { %3413 = vmatpush3.msra.mxu0 %v460_v0  ;;  %3619 = vmatpush3.msra.mxu1 %v460_v0  ;;  %v3828_v25 = vld [vmem:[%s5623_s1] sm:$0xff]  ;;  %v3830_v26 = vshrl.u32 %v363_v18, 7  ;;  %v998_v31 = vld [vmem:[%s5625_s3 + $0x8] sm:$0xff]  ;;  %vm980_vm13 = vcmask 261120   ;;  %vm1003_vm14 = vcmask 392192   ;;  %s3698_s25 = smov 64  }
   0xe   : > { %s5680_s17 = smov (!%p352_p3, %s3196_s17), 31  ;;  %3438 = vmatprep.subr.mxu1 %v1002_v17  ;;  %v997_v36 = vld [vmem:[%s5625_s3] sm:$0xff] }
   0xf   : > { %s3197_s18 = sshll.u32 %s5680_s17, 3  ;;  %5649 = vst [vmem:[#allocation2_spill] sm:$0xff] %v3830_v26  ;;  %vm770_vm1 = vcmp.lt.s32.totalorder %v3830_v26, 1  ;;  %vm689_vm2 = vcmp.lt.s32.totalorder %v3830_v26, 2  ;;  %v3865_v48 = vand.u32 15, %v3830_v26  ;;  %v366_v49 = vadd.s32 16, %v3830_v26 }
  0x10   : > { %s3774_s21 = scalar_lea.vmem %s5622_s0, %s3197_s18  ;;  %s5540_s20 = scalar_lea.vmem %s5632_s10, %s3197_s18 }
  0x11   : > { %v444_v1 = vld [vmem:[%s3774_s21] sm:$0xff]  ;;  %v445_v3 = vld [vmem:[%s3774_s21 + $0x8] sm:$0xff]  ;;  %v446_v5 = vld [vmem:[%s3774_s21 + $0x10] sm:$0xff]  ;;  %vm396_vm3 = vcmp.ge.s32.totalorder %v3865_v48, 1  ;;  %vm5633_vm12 = vcmp.ge.s32.totalorder %v3865_v48, 2 }
  0x12   : > { %v456_v2 = vld [vmem:[%s3774_s21 + $0x60] sm:$0xff]  ;;  %3414 = vmatprep.mubr.msk.f32.mxu0 %vm461_vm0, %v444_v1  ;;  %v457_v4 = vld [vmem:[%s3774_s21 + $0x68] sm:$0xff]  ;;  %v458_v6 = vld [vmem:[%s3774_s21 + $0x70] sm:$0xff] }
  0x13   : > { %3432 = vmatprep.mubr.msk.f32.mxu1 %vm461_vm0, %v456_v2  ;;  %3415 = vmatmul.mubr.msk.f32.vlgmr.msra.gmra.mxu0 %vm461_vm0, %v445_v3  ;;  %v447_v7 = vld [vmem:[%s3774_s21 + $0x18] sm:$0xff]  ;;  %v448_v9 = vld [vmem:[%s3774_s21 + $0x20] sm:$0xff]  ;;  %v449_v10 = vld [vmem:[%s3774_s21 + $0x28] sm:$0xff]  ;;  %v3910_v3 = vand.u32 15, %v366_v49 }
  0x14   : > { %3433 = vmatmul.mubr.msk.f32.vlgmr.msra.gmra.mxu1 %vm461_vm0, %v457_v4  ;;  %3417 = vmatprep.mubr.msk.f32.mxu0 %vm461_vm0, %v446_v5  ;;  %v459_v8 = vld [vmem:[%s3774_s21 + $0x78] sm:$0xff]  ;;  %v450_v11 = vld [vmem:[%s3774_s21 + $0x30] sm:$0xff]  ;;  %v452_v13 = vld [vmem:[%s3774_s21 + $0x40] sm:$0xff] }
  0x15   : > { %3435 = vmatprep.mubr.msk.f32.mxu1 %vm461_vm0, %v458_v6  ;;  %v451_v12 = vld [vmem:[%s3774_s21 + $0x38] sm:$0xff]  ;;  %v453_v14 = vld [vmem:[%s3774_s21 + $0x48] sm:$0xff]  ;;  %v454_v15 = vld [vmem:[%s3774_s21 + $0x50] sm:$0xff]  ;;  %3439 = vmatpush3.msra.mxu1 %v1002_v17  ;;  %vm398_vm4 = vcmp.ge.s32.totalorder %v3910_v3, 1  ;;  %v368_v17 = vadd.s32 32, %v3830_v26  ;;  %vm414_vm15 = vcmp.ge.s32.totalorder %v3910_v3, 2 }
  0x16   : > { %v455_v16 = vld [vmem:[%s3774_s21 + $0x58] sm:$0xff]  ;;  %3440 = vmatprep.subr.mxu1 %v1001_v19  ;;  %s3699_s21 = smov 96  }
  0x17   : > { %3418 = vmatmul.mubr.msk.f32.gmra.mxu0 %vm461_vm0, %v447_v7  ;;  %3441 = vmatpush3.msra.mxu1 %v1001_v19 }
  0x18   : > { %3436 = vmatmul.mubr.msk.f32.gmra.mxu1 %vm461_vm0, %v459_v8  ;;  %3420 = vmatprep.mubr.msk.f32.mxu0 %vm461_vm0, %v448_v9 }
  0x19   : > { %3442 = vmatprep.subr.mxu1 %v1000_v20 }
  0x1a   : > { %3443 = vmatpush3.msra.mxu1 %v1000_v20 }
  0x1b   : > { %3421 = vmatmul.mubr.msk.f32.gmra.mxu0 %vm461_vm0, %v449_v10  ;;  %3444 = vmatprep.subr.mxu1 %v999_v22 }
  0x1c   : > { %3423 = vmatprep.mubr.msk.f32.mxu0 %vm461_vm0, %v450_v11  ;;  %3445 = vmatpush3.msra.mxu1 %v999_v22 }
  0x1d   : > { %3446 = vmatprep.subr.mxu1 %v998_v31 }
  0x1e   : > { %3447 = vmatpush3.msra.mxu1 %v998_v31 }
  0x1f   : > { %3424 = vmatmul.mubr.msk.f32.gmra.mxu0 %vm461_vm0, %v451_v12  ;;  %3448 = vmatprep.subr.mxu1 %v997_v36 }
  0x20   : > { %3426 = vmatprep.mubr.msk.f32.mxu0 %vm461_vm0, %v452_v13  ;;  %3449 = vmatpush3.msra.mxu1 %v997_v36 }
  0x23   : > { %3427 = vmatmul.mubr.msk.f32.gmra.mxu0 %vm461_vm0, %v453_v14 }
  0x24   : > { %3429 = vmatprep.mubr.msk.f32.mxu0 %vm461_vm0, %v454_v15 }
  0x27   : > { %3430 = vmatmul.mubr.msk.f32.gmra.mxu0 %vm461_vm0, %v455_v16 }
  0xd3   : > { %v3416_v23 = vpop.f32.mrf.mxu0 }
  0xd4   : > { %v3434_v24 = vpop.f32.mrf.mxu1  ;;  %v3833_v27 = vadd.f32 %v3416_v23, %v3820_v21 }
  0xd5   : > { %v3836_v28 = vadd.f32 %v3434_v24, %v3820_v21  ;;  %v576_v29 = vpop.f32.mrf.mxu0 }
  0xd6   : > { %v636_v30 = vpop.f32.mrf.mxu1  ;;  %v657_v32 = vadd.f32 %v3828_v25, %v576_v29  ;;  %917 = vrot.lane.b32.xlu1 %v3833_v27, %s3696_s19  ;;  %v755_v45 = vrot.slane %v3833_v27, 7  ;;  %v674_v46 = vrot.slane %v3833_v27, 6 }
  0xd7   : > { %v3845_v33 = vadd.f32 %v3828_v25, %v636_v30  ;;  %v3419_v34 = vpop.f32.mrf.mxu0  ;;  %v686_v37 = vrot.slane %v3836_v28, 6  ;;  %v767_v47 = vrot.slane %v3836_v28, 7 }
  0xd8   : > { %v3437_v35 = vpop.f32.mrf.mxu1  ;;  %v673_v38 = vrot.slane %v657_v32, 6  ;;  %v754_v40 = vrot.slane %v657_v32, 7  ;;  %v3857_v42 = vadd.f32 %v3419_v34, %v3820_v21 }
  0xd9   : > { %v3853_v39 = vadd.f32 %v3437_v35, %v3820_v21  ;;  %v685_v41 = vrot.slane %v3845_v33, 6  ;;  %v586_v43 = vpop.f32.mrf.mxu0  ;;  %v766_v50 = vrot.slane %v3845_v33, 7 }
  0xda   : > { %v646_v44 = vpop.f32.mrf.mxu1  ;;  %915 = vrot.lane.b32.xlu1 %v657_v32, %s3696_s19  ;;  %v659_v52 = vadd.f32 %v3828_v25, %v586_v43  ;;  %v785_v53 = vsel %vm770_vm1, %v754_v40, %v755_v45  ;;  %v3879_v56 = vsel %vm689_vm2, %v673_v38, %v674_v46  ;;  %v676_v58 = vrot.slane %v3857_v42, 6 }
  0xdb   : > { %v769_v51 = vrot.slane %v3853_v39, 7  ;;  %v3422_v54 = vpop.f32.mrf.mxu0  ;;  %v3874_v55 = vadd.f32 %v3828_v25, %v646_v44  ;;  %853 = vrot.lane.b32.xlu0 %v785_v53, %s3697_s22  ;;  %v3887_v57 = vsel %vm689_vm2, %v685_v41, %v686_v37  ;;  %v688_v59 = vrot.slane %v3853_v39, 6 }
  0xdc   : > { %v675_v60 = vrot.slane %v659_v52, 6  ;;  %v3892_v62 = vadd.f32 %v3422_v54, %v3820_v21  ;;  %v773_v1 = vsel %vm770_vm1, %v766_v50, %v767_v47  ;;  %v756_v4 = vrot.slane %v659_v52, 7 }
  0xdd   : > { %v596_v61 = vpop.f32.mrf.mxu0  ;;  %v786_v2 = vsel %vm770_vm1, %v769_v51, %v754_v40  ;;  %v687_v5 = vrot.slane %v3874_v55, 6  ;;  %v3921_v10 = vsel %vm689_vm2, %v688_v59, %v673_v38  ;;  %v757_v18 = vrot.slane %v3857_v42, 7 }
  0xde   : > { %v3895_v63 = vadd.f32 %v3828_v25, %v596_v61  ;;  %921 = vrot.lane.b32.xlu1 %v3857_v42, %s3696_s19  ;;  %v678_v6 = vrot.slane %v3892_v62, 6  ;;  %v3925_v11 = vsel %vm689_vm2, %v674_v46, %v675_v60  ;;  %v3929_v12 = vsel %vm689_vm2, %v675_v60, %v676_v58 }
  0xdf   : > { %v3425_v0 = vpop.f32.mrf.mxu0  ;;  %919 = vrot.lane.b32.xlu0 %v659_v52, %s3696_s19  ;;  %v819_v15 = vsel %vm396_vm3, %v786_v2, 0.0  ;;  %v784_v20 = vsel %vm770_vm1, %v755_v45, %v756_v4  ;;  %v3958_v29 = vsel %vm689_vm2, %v687_v5, %v688_v59  ;;  %v3964_v30 = vsel %vm689_vm2, %v686_v37, %v687_v5 }
  0xe0   : > { %v677_v7 = vrot.slane %v3895_v63, 6  ;;  %v3917_v8 = vadd.f32 %v3425_v0, %v3820_v21  ;;  %v821_v34 = vsel %vm398_vm4, %v784_v20, 0.0  ;;  %v758_v37 = vrot.slane %v3895_v63, 7 }
  0xe1   : > { %v606_v9 = vpop.f32.mrf.mxu0  ;;  %v3983_v43 = vand.u32 15, %v368_v17  ;;  %v783_v44 = vsel %vm770_vm1, %v756_v4, %v757_v18  ;;  %v372_v2 = vadd.s32 64, %v3830_v26 }
  0xe2   : > { %v3932_v13 = vadd.f32 %v3828_v25, %v606_v9  ;;  %877 = vrot.lane.b32.xlu1 %v773_v1, %s3697_s22  ;;  %v680_v14 = vrot.slane %v3917_v8, 6  ;;  %v3947_v22 = vsel %vm689_vm2, %v676_v58, %v677_v7  ;;  %v3954_v27 = vsel %vm689_vm2, %v677_v7, %v678_v6 }
  0xe3   : > { %v3428_v16 = vpop.f32.mrf.mxu0  ;;  %851 = vrot.lane.b32.xlu0 %v819_v15, %s3697_s22  ;;  %vm400_vm5 = vcmp.ge.s32.totalorder %v3983_v43, 1  ;;  %v370_v58 = vadd.s32 48, %v3830_v26  ;;  %v761_v4 = vrot.slane %v3917_v8, 7  ;;  %v4041_v7 = vand.u32 15, %v372_v2 }
  0xe4   : > { %v679_v19 = vrot.slane %v3932_v13, 6  ;;  %v3950_v23 = vadd.f32 %v3428_v16, %v3820_v21  ;;  %vm5634_vm0 = vcmp.ge.s32.totalorder %v3983_v43, 2 }
  0xe5   : > { %v616_v24 = vpop.f32.mrf.mxu0  ;;  %vm404_vm7 = vcmp.ge.s32.totalorder %v4041_v7, 1 }
  0xe6   : > { %v665_v31 = vadd.f32 %v3828_v25, %v616_v24  ;;  %925 = vrot.lane.b32.xlu1 %v3892_v62, %s3696_s19  ;;  %v682_v32 = vrot.slane %v3950_v23, 6  ;;  %v3974_v36 = vsel %vm689_vm2, %v678_v6, %v679_v19  ;;  %v3978_v38 = vsel %vm689_vm2, %v679_v19, %v680_v14 }
  0xe7   : > { %v3431_v35 = vpop.f32.mrf.mxu0  ;;  %855 = vrot.lane.b32.xlu0 %v821_v34, %s3697_s22 }
  0xe8   : > { %v681_v40 = vrot.slane %v665_v31, 6  ;;  %v668_v42 = vadd.f32 %v3431_v35, %v3820_v21  ;;  %v782_v21 = vsel %vm770_vm1, %v757_v18, %v758_v37  ;;  %v762_v6 = vrot.slane %v665_v31, 7 }
  0xe9   : > { %v626_v45 = vpop.f32.mrf.mxu0  ;;  %v823_v61 = vsel %vm400_vm5, %v782_v21, 0.0  ;;  %v374_v18 = vadd.s32 80, %v3830_v26  ;;  %v378_v35 = vadd.s32 112, %v3830_v26 }
  0xea   : > { %v684_v46 = vrot.slane %v668_v42, 6  ;;  %857 = vrot.lane.b32.xlu1 %v783_v44, %s3697_s22  ;;  %v667_v49 = vadd.f32 %v3828_v25, %v626_v45  ;;  %v3991_v52 = vsel %vm689_vm2, %v680_v14, %v681_v40  ;;  %v3995_v53 = vsel %vm689_vm2, %v681_v40, %v682_v32 }
  0xeb   : > { %923 = vrot.lane.b32.xlu0 %v3895_v63, %s3696_s19  ;;  %v759_v25 = vrot.slane %v3892_v62, 7  ;;  %v760_v62 = vrot.slane %v3932_v13, 7  ;;  %v763_v14 = vrot.slane %v3950_v23, 7  ;;  %v765_v16 = vrot.slane %v668_v42, 7 }
  0xec   : > { %v683_v54 = vrot.slane %v667_v49, 6  ;;  %v4008_v59 = vsel %vm689_vm2, %v684_v46, %v685_v41  ;;  %v4024_v41 = vand.u32 15, %v370_v58  ;;  %v764_v20 = vrot.slane %v667_v49, 7 }
  0xed   : > { %v781_v0 = vsel %vm770_vm1, %v758_v37, %v759_v25  ;;  %v780_v1 = vsel %vm770_vm1, %v759_v25, %v760_v62  ;;  %v779_v9 = vsel %vm770_vm1, %v760_v62, %v761_v4  ;;  %v777_v19 = vsel %vm770_vm1, %v762_v6, %v763_v14 }
  0xee   : > { %929 = vrot.lane.b32.xlu1 %v3917_v8, %s3696_s19  ;;  %v4014_v60 = vsel %vm689_vm2, %v683_v54, %v684_v46  ;;  %v4020_v63 = vsel %vm689_vm2, %v682_v32, %v683_v54  ;;  %vm402_vm6 = vcmp.ge.s32.totalorder %v4024_v41, 1  ;;  %v778_v8 = vsel %vm770_vm1, %v761_v4, %v762_v6 }
  0xef   : > { %859 = vrot.lane.b32.xlu0 %v823_v61, %s3697_s22  ;;  %v825_v5 = vsel %vm402_vm6, %v780_v1, 0.0  ;;  %v827_v15 = vsel %vm404_vm7, %v778_v8, 0.0  ;;  %v4068_v24 = vand.u32 15, %v374_v18  ;;  %v776_v34 = vsel %vm770_vm1, %v763_v14, %v764_v20 }
  0xf0   : > { %v4086_v40 = vand.u32 15, %v378_v35 }
  0xf1   : > { %vm406_vm9 = vcmp.ge.s32.totalorder %v4068_v24, 1 }
  0xf2   : > { %861 = vrot.lane.b32.xlu1 %v781_v0, %s3697_s22  ;;  %v829_v37 = vsel %vm406_vm9, %v776_v34, 0.0  ;;  %vm410_vm10 = vcmp.ge.s32.totalorder %v4086_v40, 1 }
  0xf3   : > { %927 = vrot.lane.b32.xlu0 %v3932_v13, %s3696_s19  ;;  %v376_v13 = vadd.s32 96, %v3830_v26 }
  0xf5   : > { %v4056_v17 = vand.u32 15, %v376_v13 }
  0xf6   : > { %933 = vrot.lane.b32.xlu1 %v3950_v23, %s3696_s19  ;;  %v774_v23 = vsel %vm770_vm1, %v765_v16, %v766_v50  ;;  %v768_v50 = vrot.slane %v3874_v55, 7 }
  0xf7   : > { %863 = vrot.lane.b32.xlu0 %v825_v5, %s3697_s22  ;;  %vm408_vm8 = vcmp.ge.s32.totalorder %v4056_v17, 1 }
  0xf8   : > { %v831_v32 = vsel %vm408_vm8, %v774_v23, 0.0  ;;  %v772_v44 = vsel %vm770_vm1, %v767_v47, %v768_v50  ;;  %v738_v47 = vsel %vm5633_vm12, %v3921_v10, 0.0  ;;  %v740_v10 = vsel %vm414_vm15, %v3925_v11, 0.0 }
  0xf9   : > { %v833_v45 = vsel %vm410_vm10, %v772_v44, 0.0  ;;  %v742_v11 = vsel %vm5634_vm0, %v3947_v22, 0.0  ;;  %vm5635_vm12 = vcmp.ge.s32.totalorder %v4024_v41, 2  ;;  %vm5636_vm0 = vcmp.ge.s32.totalorder %v4041_v7, 2 }
  0xfa   : > { %865 = vrot.lane.b32.xlu1 %v779_v9, %s3697_s22  ;;  %v744_v22 = vsel %vm5635_vm12, %v3974_v36, 0.0  ;;  %v746_v36 = vsel %vm5636_vm0, %v3991_v52, 0.0  ;;  %vm422_vm12 = vcmp.ge.s32.totalorder %v4068_v24, 2  ;;  %vm5637_vm0 = vcmp.ge.s32.totalorder %v4056_v17, 2 }
  0xfb   : > { %931 = vrot.lane.b32.xlu0 %v665_v31, %s3696_s19  ;;  %v775_v31 = vsel %vm770_vm1, %v764_v20, %v765_v16 }
  0xfe   : > { %937 = vrot.lane.b32.xlu1 %v668_v42, %s3696_s19  ;;  %v771_v42 = vsel %vm770_vm1, %v768_v50, %v769_v51 }
  0xff   : > { %867 = vrot.lane.b32.xlu0 %v827_v15, %s3697_s22 }
 0x102   : > { %869 = vrot.lane.b32.xlu1 %v777_v19, %s3697_s22 }
 0x103   : > { %935 = vrot.lane.b32.xlu0 %v667_v49, %s3696_s19 }
 0x106   : > { %873 = vrot.lane.b32.xlu1 %v775_v31, %s3697_s22 }
 0x107   : > { %875 = vrot.lane.b32.xlu0 %v831_v32, %s3697_s22 }
 0x10a   : > { %941 = vrot.lane.b32.xlu1 %v3836_v28, %s3696_s19 }
 0x10b   : > { %871 = vrot.lane.b32.xlu0 %v829_v37, %s3697_s22 }
 0x10e   : > { %881 = vrot.lane.b32.xlu1 %v771_v42, %s3697_s22 }
 0x10f   : > { %939 = vrot.lane.b32.xlu0 %v3845_v33, %s3696_s19 }
 0x112   : > { %945 = vrot.lane.b32.xlu1 %v3853_v39, %s3696_s19 }
 0x113   : > { %879 = vrot.lane.b32.xlu0 %v833_v45, %s3697_s22 }
 0x117   : > { %943 = vrot.lane.b32.xlu0 %v3874_v55, %s3696_s19 }
 0x148   : > { %v918_v51 = vpop.permute.xlu1 %917 }
 0x14c   : > { %v916_v33 = vpop.permute.xlu1 %915 }
 0x14d   : > { %v854_v46 = vpop.permute.xlu0 %853 }
 0x14e   : > { %v965_v39 = vsel %vm963_vm11, %v3879_v56, %v854_v46 }
 0x14f   : > { %v982_v61 = vsel %vm980_vm13, %v965_v39, %v918_v51 }
 0x150   : > { %v922_v49 = vpop.permute.xlu1 %921 }
 0x151   : > { %v920_v21 = vpop.permute.xlu0 %919 }
 0x154   : > { %v4108_v28 = vpop.permute.xlu1 %877 }
 0x155   : > { %v852_v54 = vpop.permute.xlu0 %851 }
 0x156   : > { %v964_v55 = vsel %vm963_vm11, %v738_v47, %v852_v54  ;;  %v750_v54 = vsel %vm5637_vm0, %v4008_v59, 0.0  ;;  %vm426_vm0 = vcmp.ge.s32.totalorder %v4086_v40, 2 }
 0x157   : > { %v981_v58 = vsel %vm980_vm13, %v964_v55, %v916_v33 }
 0x158   : > { %v926_v25 = vpop.permute.xlu1 %925  ;;  %3450 = vmatprep.mubr.msk.f32.mxu1 %vm1003_vm14, %v981_v58 }
 0x159   : > { %3451 = vmatmul.mubr.msk.f32.vlgmr.msra.gmra.mxu1 %vm1003_vm14, %v982_v61  ;;  %v856_v56 = vpop.permute.xlu0 %855  ;;  %v977_v61 = vsel %vm963_vm11, %v3887_v57, %v4108_v28 }
 0x15a   : > { %v966_v62 = vsel %vm963_vm11, %v740_v10, %v856_v56 }
 0x15b   : > { %v983_v0 = vsel %vm980_vm13, %v966_v62, %v920_v21  ;;  %v752_v62 = vsel %vm426_vm0, %v3964_v30, 0.0 }
 0x15c   : > { %v858_v1 = vpop.permute.xlu1 %857  ;;  %3453 = vmatprep.mubr.msk.f32.mxu1 %vm1003_vm14, %v983_v0 }
 0x15d   : > { %v967_v2 = vsel %vm963_vm11, %v3929_v12, %v858_v1  ;;  %v924_v4 = vpop.permute.xlu0 %923 }
 0x15e   : > { %v984_v5 = vsel %vm980_vm13, %v967_v2, %v922_v49 }
 0x15f   : > { %3454 = vmatmul.mubr.msk.f32.gmra.mxu1 %vm1003_vm14, %v984_v5 }
 0x160   : > { %v930_v6 = vpop.permute.xlu1 %929 }
 0x161   : > { %v860_v9 = vpop.permute.xlu0 %859 }
 0x162   : > { %v968_v8 = vsel %vm963_vm11, %v742_v11, %v860_v9 }
 0x163   : > { %v985_v13 = vsel %vm980_vm13, %v968_v8, %v924_v4  ;;  %v4201_v4 = vld [vmem:[%s5627_s5] ss:$0 sm:$0xff] }
 0x164   : > { %v862_v14 = vpop.permute.xlu1 %861  ;;  %3456 = vmatprep.mubr.msk.f32.mxu1 %vm1003_vm14, %v985_v13 }
 0x165   : > { %v969_v12 = vsel %vm963_vm11, %v3954_v27, %v862_v14  ;;  %v928_v15 = vpop.permute.xlu0 %927 }
 0x166   : > { %v986_v16 = vsel %vm980_vm13, %v969_v12, %v926_v25 }
 0x167   : > { %3457 = vmatmul.mubr.msk.f32.gmra.mxu1 %vm1003_vm14, %v986_v16 }
 0x168   : > { %v934_v18 = vpop.permute.xlu1 %933 }
 0x169   : > { %v864_v19 = vpop.permute.xlu0 %863 }
 0x16a   : > { %v970_v20 = vsel %vm963_vm11, %v744_v22, %v864_v19 }
 0x16b   : > { %v987_v23 = vsel %vm980_vm13, %v970_v20, %v928_v15 }
 0x16c   : > { %v866_v31 = vpop.permute.xlu1 %865  ;;  %3459 = vmatprep.mubr.msk.f32.mxu1 %vm1003_vm14, %v987_v23 }
 0x16d   : > { %v971_v27 = vsel %vm963_vm11, %v3978_v38, %v866_v31  ;;  %v932_v32 = vpop.permute.xlu0 %931 }
 0x16e   : > { %v988_v34 = vsel %vm980_vm13, %v971_v27, %v930_v6 }
 0x16f   : > { %3460 = vmatmul.mubr.msk.f32.gmra.mxu1 %vm1003_vm14, %v988_v34 }
 0x170   : > { %v938_v35 = vpop.permute.xlu1 %937 }
 0x171   : > { %v868_v50 = vpop.permute.xlu0 %867 }
 0x172   : > { %v972_v37 = vsel %vm963_vm11, %v746_v36, %v868_v50 }
 0x173   : > { %v989_v42 = vsel %vm980_vm13, %v972_v37, %v932_v32 }
 0x174   : > { %v870_v44 = vpop.permute.xlu1 %869  ;;  %3462 = vmatprep.mubr.msk.f32.mxu1 %vm1003_vm14, %v989_v42 }
 0x175   : > { %v973_v38 = vsel %vm963_vm11, %v3995_v53, %v870_v44  ;;  %v936_v45 = vpop.permute.xlu0 %935  ;;  %v748_v53 = vsel %vm422_vm12, %v4020_v63, 0.0 }
 0x176   : > { %v990_v51 = vsel %vm980_vm13, %v973_v38, %v934_v18 }
 0x177   : > { %3463 = vmatmul.mubr.msk.f32.gmra.mxu1 %vm1003_vm14, %v990_v51 }
 0x178   : > { %v874_v33 = vpop.permute.xlu1 %873 }
 0x179   : > { %v876_v46 = vpop.permute.xlu0 %875  ;;  %v975_v49 = vsel %vm963_vm11, %v4014_v60, %v874_v33 }
 0x17a   : > { %v992_v55 = vsel %vm980_vm13, %v975_v49, %v938_v35  ;;  %v976_v60 = vsel %vm963_vm11, %v750_v54, %v876_v46 }
 0x17c   : > { %v942_v52 = vpop.permute.xlu1 %941 }
 0x17d   : > { %v872_v21 = vpop.permute.xlu0 %871  ;;  %v994_v59 = vsel %vm980_vm13, %v977_v61, %v942_v52 }
 0x17e   : > { %v974_v39 = vsel %vm963_vm11, %v748_v53, %v872_v21 }
 0x17f   : > { %v991_v47 = vsel %vm980_vm13, %v974_v39, %v936_v45 }
 0x180   : > { %3465 = vmatprep.mubr.msk.f32.mxu1 %vm1003_vm14, %v991_v47  ;;  %v882_v25 = vpop.permute.xlu1 %881  ;;  %v1527_v47 = vld [vmem:[%s5626_s4 + $0x58] sm:$0xff] }
 0x181   : > { %v940_v58 = vpop.permute.xlu0 %939  ;;  %3466 = vmatmul.mubr.msk.f32.gmra.mxu1 %vm1003_vm14, %v992_v55  ;;  %v979_v57 = vsel %vm963_vm11, %v3958_v29, %v882_v25  ;;  %3474 = vmatprep.subr.mxu0 %v1527_v47 }
 0x182   : > { %v993_v63 = vsel %vm980_vm13, %v976_v60, %v940_v58  ;;  %3475 = vmatpush3.msra.mxu0 %v1527_v47 }
 0x183   : > { %3468 = vmatprep.mubr.msk.f32.mxu1 %vm1003_vm14, %v993_v63 }
 0x184   : > { %v946_v10 = vpop.permute.xlu1 %945 }
 0x185   : > { %v880_v56 = vpop.permute.xlu0 %879  ;;  %3469 = vmatmul.mubr.msk.f32.gmra.mxu1 %vm1003_vm14, %v994_v59  ;;  %v996_v2 = vsel %vm980_vm13, %v979_v57, %v946_v10  ;;  %v1526_v10 = vld [vmem:[%s5626_s4 + $0x50] sm:$0xff] }
 0x186   : > { %v978_v0 = vsel %vm963_vm11, %v752_v62, %v880_v56  ;;  %v1525_v62 = vld [vmem:[%s5626_s4 + $0x48] sm:$0xff]  ;;  %3476 = vmatprep.subr.mxu0 %v1526_v10 }
 0x187   : > { %3477 = vmatpush3.msra.mxu0 %v1526_v10 }
 0x188   : > { %3478 = vmatprep.subr.mxu0 %v1525_v62 }
 0x189   : > { %v944_v1 = vpop.permute.xlu0 %943  ;;  %3479 = vmatpush3.msra.mxu0 %v1525_v62 }
 0x18a   : > { %v995_v28 = vsel %vm980_vm13, %v978_v0, %v944_v1 }
 0x18b   : > { %3471 = vmatprep.mubr.msk.f32.mxu1 %vm1003_vm14, %v995_v28 }
 0x18c   : > { %3472 = vmatmul.mubr.msk.f32.gmra.mxu1 %vm1003_vm14, %v996_v2 }
 0x219   : > { %v4203_v30 = vpop.f32.mrf.mxu1 }
 0x21a   : > { %v1203_v5 = vadd.f32 %v4203_v30, %v4201_v4 }
 0x21b   : > { %v4207_v6 = vpop.f32.mrf.mxu1 }
 0x21c   : > { %v1219_v29 = vmax.f32 %v1203_v5, 0.0  ;;  %v1202_v9 = vadd.f32 %v4201_v4, %v4207_v6 }
 0x21e   : > { %v4211_v11 = vmax.f32 %v1202_v9, 0.0  ;;  %1437 = vrot.lane.b32.xlu1 %v1219_v29, %s3698_s25  ;;  %v1260_v14 = vrot.slane %v1219_v29, 6  ;;  %v1308_v23 = vrot.slane %v1219_v29, 7 }
 0x21f   : > { %v4214_v8 = vpop.f32.mrf.mxu1 }
 0x220   : > { %v1205_v13 = vadd.f32 %v4214_v8, %v4201_v4  ;;  %v1259_v12 = vrot.slane %v4211_v11, 6  ;;  %1435 = vrot.lane.b32.xlu0 %v4211_v11, %s3698_s25  ;;  %v1307_v19 = vrot.slane %v4211_v11, 7 }
 0x221   : > { %v4221_v15 = vpop.f32.mrf.mxu1 }
 0x222   : > { %v1221_v16 = vmax.f32 %v1205_v13, 0.0  ;;  %v1204_v18 = vadd.f32 %v4201_v4, %v4221_v15  ;;  %v4230_v22 = vsel %vm689_vm2, %v1259_v12, %v1260_v14  ;;  %v1337_v35 = vsel %vm770_vm1, %v1307_v19, %v1308_v23 }
 0x224   : > { %v1220_v20 = vmax.f32 %v1204_v18, 0.0  ;;  %1441 = vrot.lane.b32.xlu1 %v1221_v16, %s3698_s25  ;;  %v1262_v32 = vrot.slane %v1221_v16, 6  ;;  %v1310_v46 = vrot.slane %v1221_v16, 7 }
 0x226   : > { %v1261_v31 = vrot.slane %v1220_v20, 6  ;;  %v1309_v27 = vrot.slane %v1220_v20, 7  ;;  %1439 = vrot.lane.b32.xlu0 %v1220_v20, %s3698_s25 }
 0x227   : > { %v4234_v34 = vpop.f32.mrf.mxu1 }
 0x228   : > { %v1207_v50 = vadd.f32 %v4234_v34, %v4201_v4  ;;  %1373 = vrot.lane.b32.xlu1 %v1337_v35, %s3696_s19  ;;  %v1336_v36 = vsel %vm770_vm1, %v1308_v23, %v1309_v27  ;;  %v4247_v37 = vsel %vm689_vm2, %v1260_v14, %v1261_v31  ;;  %v4255_v38 = vsel %vm689_vm2, %v1261_v31, %v1262_v32  ;;  %v1524_v14 = vld [vmem:[%s5626_s4 + $0x40] sm:$0xff]  ;;  %v1523_v31 = vld [vmem:[%s5626_s4 + $0x38] sm:$0xff] }
 0x229   : > { %v4249_v42 = vpop.f32.mrf.mxu1  ;;  %v1341_v44 = vsel %vm398_vm4, %v1336_v36, 0.0  ;;  %v1335_v39 = vsel %vm770_vm1, %v1309_v27, %v1310_v46  ;;  %3480 = vmatprep.subr.mxu0 %v1524_v14  ;;  %vm1533_vm4 = vcmask 785408  }
 0x22a   : > { %v1223_v45 = vmax.f32 %v1207_v50, 0.0  ;;  %v1206_v51 = vadd.f32 %v4201_v4, %v4249_v42  ;;  %1375 = vrot.lane.b32.xlu0 %v1341_v44, %s3696_s19  ;;  %3481 = vmatpush3.msra.mxu0 %v1524_v14  ;;  %v1522_v50 = vld [vmem:[%s5626_s4 + $0x30] sm:$0xff] }
 0x22b   : > { %3482 = vmatprep.subr.mxu0 %v1523_v31 }
 0x22c   : > { %v1222_v33 = vmax.f32 %v1206_v51, 0.0  ;;  %1445 = vrot.lane.b32.xlu1 %v1223_v45, %s3698_s25  ;;  %v1264_v21 = vrot.slane %v1223_v45, 6  ;;  %v1312_v0 = vrot.slane %v1223_v45, 7  ;;  %3483 = vmatpush3.msra.mxu0 %v1523_v31  ;;  %v1516_v31 = vld [vmem:[%s5626_s4] sm:$0xff] }
 0x22d   : > { %3484 = vmatprep.subr.mxu0 %v1522_v50 }
 0x22e   : > { %v1263_v52 = vrot.slane %v1222_v33, 6  ;;  %v1311_v49 = vrot.slane %v1222_v33, 7  ;;  %1443 = vrot.lane.b32.xlu0 %v1222_v33, %s3698_s25  ;;  %3485 = vmatpush3.msra.mxu0 %v1522_v50 }
 0x22f   : > { %v4262_v53 = vpop.f32.mrf.mxu1 }
 0x230   : > { %v1209_v54 = vadd.f32 %v4262_v53, %v4201_v4  ;;  %1377 = vrot.lane.b32.xlu1 %v1335_v39, %s3696_s19  ;;  %v1334_v55 = vsel %vm770_vm1, %v1310_v46, %v1311_v49  ;;  %v4276_v60 = vsel %vm689_vm2, %v1262_v32, %v1263_v52  ;;  %v4284_v63 = vsel %vm689_vm2, %v1263_v52, %v1264_v21  ;;  %v1521_v46 = vld [vmem:[%s5626_s4 + $0x28] sm:$0xff]  ;;  %v1520_v52 = vld [vmem:[%s5626_s4 + $0x20] sm:$0xff] }
 0x231   : > { %v4278_v58 = vpop.f32.mrf.mxu1  ;;  %v1343_v25 = vsel %vm400_vm5, %v1334_v55, 0.0  ;;  %v1333_v5 = vsel %vm770_vm1, %v1311_v49, %v1312_v0  ;;  %3486 = vmatprep.subr.mxu0 %v1521_v46  ;;  %v1519_v55 = vld [vmem:[%s5626_s4 + $0x18] sm:$0xff]  ;;  %vm5656_vm5 = vcmp.ge.s32.totalorder %v3983_v43, 2 }
 0x232   : > { %v4286_v61 = vmax.f32 %v1209_v54, 0.0  ;;  %v1208_v59 = vadd.f32 %v4201_v4, %v4278_v58  ;;  %1379 = vrot.lane.b32.xlu0 %v1343_v25, %s3696_s19  ;;  %3487 = vmatpush3.msra.mxu0 %v1521_v46  ;;  %v1518_v25 = vld [vmem:[%s5626_s4 + $0x10] sm:$0xff] }
 0x233   : > { %3488 = vmatprep.subr.mxu0 %v1520_v52 }
 0x234   : > { %v1224_v56 = vmax.f32 %v1208_v59, 0.0  ;;  %1449 = vrot.lane.b32.xlu1 %v4286_v61, %s3698_s25  ;;  %v1266_v28 = vrot.slane %v4286_v61, 6  ;;  %v5639_v20 = vrot.slane %v4286_v61, 7  ;;  %3489 = vmatpush3.msra.mxu0 %v1520_v52 }
 0x235   : > { %3490 = vmatprep.subr.mxu0 %v1519_v55 }
 0x236   : > { %v1265_v1 = vrot.slane %v1224_v56, 6  ;;  %v1313_v57 = vrot.slane %v1224_v56, 7  ;;  %1447 = vrot.lane.b32.xlu0 %v1224_v56, %s3698_s25  ;;  %3491 = vmatpush3.msra.mxu0 %v1519_v55 }
 0x237   : > { %v4301_v2 = vpop.f32.mrf.mxu1  ;;  %3492 = vmatprep.subr.mxu0 %v1518_v25 }
 0x238   : > { %v1211_v29 = vadd.f32 %v4301_v2, %v4201_v4  ;;  %1381 = vrot.lane.b32.xlu1 %v1333_v5, %s3696_s19  ;;  %v1332_v9 = vsel %vm770_vm1, %v1312_v0, %v1313_v57  ;;  %v4312_v13 = vsel %vm689_vm2, %v1264_v21, %v1265_v1  ;;  %v4324_v23 = vsel %vm689_vm2, %v1265_v1, %v1266_v28 }
 0x239   : > { %v4317_v16 = vpop.f32.mrf.mxu1  ;;  %v1345_v18 = vsel %vm402_vm6, %v1332_v9, 0.0  ;;  %v1331_v35 = vsel %vm770_vm1, %v1313_v57, %v5639_v20  ;;  %3493 = vmatpush3.msra.mxu0 %v1518_v25  ;;  %v1517_v57 = vld [vmem:[%s5626_s4 + $0x8] sm:$0xff]  ;;  %vm5657_vm6 = vcmp.ge.s32.totalorder %v4024_v41, 2 }
 0x23a   : > { %v4329_v27 = vmax.f32 %v1211_v29, 0.0  ;;  %v1210_v32 = vadd.f32 %v4201_v4, %v4317_v16  ;;  %1383 = vrot.lane.b32.xlu0 %v1345_v18, %s3696_s19  ;;  %3494 = vmatprep.subr.mxu0 %v1517_v57 }
 0x23b   : > { %3495 = vmatpush3.msra.mxu0 %v1517_v57 }
 0x23c   : > { %v4341_v36 = vmax.f32 %v1210_v32, 0.0  ;;  %1385 = vrot.lane.b32.xlu1 %v1331_v35, %s3696_s19  ;;  %v1268_v44 = vrot.slane %v4329_v27, 6  ;;  %v5638_v33 = vrot.slane %v4329_v27, 7  ;;  %3496 = vmatprep.subr.mxu0 %v1516_v31 }
 0x23d   : > { %3497 = vmatpush3.msra.mxu0 %v1516_v31 }
 0x23e   : > { %v1267_v45 = vrot.slane %v4341_v36, 6  ;;  %v5640_v51 = vrot.slane %v4341_v36, 7 }
 0x240   : > { %v1329_v49 = vsel %vm770_vm1, %v5640_v51, %v5638_v33  ;;  %v4362_v21 = vsel %vm689_vm2, %v1267_v45, %v1268_v44  ;;  %v4366_v39 = vsel %vm689_vm2, %v1266_v28, %v1267_v45 }
 0x241   : > { %1389 = vrot.lane.b32.xlu1 %v1329_v49, %s3696_s19  ;;  %v4369_v47 = vpop.f32.mrf.mxu1 }
 0x242   : > { %v1213_v54 = vadd.f32 %v4369_v47, %v4201_v4 }
 0x243   : > { %v4379_v59 = vpop.f32.mrf.mxu1 }
 0x244   : > { %v4381_v56 = vmax.f32 %v1213_v54, 0.0  ;;  %v1212_v10 = vadd.f32 %v4201_v4, %v4379_v59 }
 0x245   : > { %1453 = vrot.lane.b32.xlu1 %v4329_v27, %s3698_s25  ;;  %v4387_v62 = vpop.f32.mrf.mxu1 }
 0x246   : > { %5650 = vst [vmem:[#allocation3_spill] sm:$0xff] %v4387_v62  ;;  %v1228_v0 = vmax.f32 %v1212_v10, 0.0  ;;  %v1215_v1 = vadd.f32 %v4387_v62, %v4201_v4  ;;  %v1318_v5 = vrot.slane %v4381_v56, 7  ;;  %v1270_v32 = vrot.slane %v4381_v56, 6 }
 0x247   : > { %v4394_v28 = vpop.f32.mrf.mxu1 }
 0x248   : > { %v1269_v29 = vrot.slane %v1228_v0, 6  ;;  %v1231_v9 = vmax.f32 %v1215_v1, 0.0  ;;  %v1214_v14 = vadd.f32 %v4201_v4, %v4394_v28  ;;  %v1317_v18 = vrot.slane %v1228_v0, 7 }
 0x24a   : > { %v1230_v35 = vmax.f32 %v1214_v14, 0.0  ;;  %v1327_v50 = vsel %vm770_vm1, %v1317_v18, %v1318_v5  ;;  %v4408_v45 = vsel %vm689_vm2, %v1269_v29, %v1270_v32  ;;  %v4412_v46 = vsel %vm689_vm2, %v1268_v44, %v1269_v29 }
 0x24b   : > { %1393 = vrot.lane.b32.xlu1 %v1327_v50, %s3696_s19  ;;  %v1272_v52 = vrot.slane %v1231_v9, 6  ;;  %v1320_v14 = vrot.slane %v1231_v9, 7 }
 0x24c   : > { %v1271_v49 = vrot.slane %v1230_v35, 6  ;;  %v4414_v54 = vpop.f32.mrf.mxu1  ;;  %v1319_v10 = vrot.slane %v1230_v35, 7 }
 0x24d   : > { %v1217_v55 = vadd.f32 %v4414_v54, %v4201_v4 }
 0x24e   : > { %v4418_v25 = vpop.f32.mrf.mxu1  ;;  %v4422_v1 = vsel %vm689_vm2, %v1271_v49, %v1272_v52  ;;  %v4426_v57 = vsel %vm689_vm2, %v1270_v32, %v1271_v49  ;;  %v1325_v20 = vsel %vm770_vm1, %v1319_v10, %v1320_v14  ;;  %v5652_v49 = vrot.slane %v4341_v36, 7 }
 0x24f   : > { %5651 = vst [vmem:[#allocation4_spill] sm:$0xff] %v4418_v25  ;;  %v1233_v44 = vmax.f32 %v1217_v55, 0.0  ;;  %v1216_v29 = vadd.f32 %v4201_v4, %v4418_v25  ;;  %1457 = vrot.lane.b32.xlu1 %v4381_v56, %s3698_s25  ;;  %v5653_v55 = vrot.slane %v4286_v61, 7 }
 0x251   : > { %v1274_v31 = vrot.slane %v1233_v44, 6  ;;  %v1322_v50 = vrot.slane %v1233_v44, 7  ;;  %v1232_v33 = vmax.f32 %v1216_v29, 0.0 }
 0x253   : > { %v1273_v51 = vrot.slane %v1232_v33, 6  ;;  %1397 = vrot.lane.b32.xlu1 %v1325_v20, %s3696_s19  ;;  %v1338_v32 = vsel %vm770_vm1, %v1322_v50, %v1307_v19  ;;  %v1290_v4 = vsel %vm689_vm2, %v1274_v31, %v1259_v12  ;;  %v1330_v20 = vsel %vm770_vm1, %v5653_v55, %v5652_v49 }
 0x254   : > { %v1339_v56 = vsel %vm396_vm3, %v1338_v32, 0.0  ;;  %v1321_v12 = vrot.slane %v1232_v33, 7  ;;  %v1347_v29 = vsel %vm404_vm7, %v1330_v20, 0.0  ;;  %vm5655_vm3 = vcmp.ge.s32.totalorder %v3865_v48, 2 }
 0x255   : > { %1371 = vrot.lane.b32.xlu0 %v1339_v56, %s3696_s19  ;;  %v4454_v19 = vsel %vm689_vm2, %v1273_v51, %v1274_v31  ;;  %v4458_v11 = vsel %vm689_vm2, %v1272_v52, %v1273_v51  ;;  %v5654_v31 = vrot.slane %v4329_v27, 7  ;;  %v1326_v52 = vsel %vm770_vm1, %v1318_v5, %v1319_v10  ;;  %vm5665_vm11 = vmmov %vm5655_vm3 }
 0x256   : > { %v1323_v61 = vsel %vm770_vm1, %v1321_v12, %v1322_v50  ;;  %v1324_v27 = vsel %vm770_vm1, %v1320_v14, %v1321_v12  ;;  %vm5658_vm7 = vcmp.ge.s32.totalorder %v4041_v7, 2 }
 0x257   : > { %1461 = vrot.lane.b32.xlu1 %v1231_v9, %s3698_s25  ;;  %v1328_v51 = vsel %vm770_vm1, %v5654_v31, %v1317_v18  ;;  %v1353_v18 = vsel %vm410_vm10, %v1324_v27, 0.0  ;;  %vm1499_vm1 = vcmask 523264   ;;  %v1291_v27 = vsel %vm5655_vm3, %v1290_v4, 0.0  ;;  %vm5664_vm10 = vmmov %vm5657_vm6 }
 0x258   : > { %v1349_v9 = vsel %vm406_vm9, %v1328_v51, 0.0  ;;  %vm5663_vm9 = vmmov %vm5656_vm5 }
 0x259   : > { %1387 = vrot.lane.b32.xlu0 %v1347_v29, %s3696_s19  ;;  %vm5666_vm14 = vmmov %vm5658_vm7 }
 0x25b   : > { %1401 = vrot.lane.b32.xlu1 %v1323_v61, %s3696_s19 }
 0x25d   : > { %1451 = vrot.lane.b32.xlu0 %v4341_v36, %s3698_s25  ;;  %v1351_v36 = vsel %vm408_vm8, %v1326_v52, 0.0  ;;  %v1293_v52 = vsel %vm414_vm15, %v4247_v37, 0.0  ;;  %v1295_v37 = vsel %vm5656_vm5, %v4276_v60, 0.0  ;;  %vm5659_vm8 = vcmp.ge.s32.totalorder %v4056_v17, 2 }
 0x25e   : > { %vm5669_vm3 = vmmov %vm5659_vm8 }
 0x25f   : > { %1465 = vrot.lane.b32.xlu1 %v1233_v44, %s3698_s25 }
 0x261   : > { %1391 = vrot.lane.b32.xlu0 %v1349_v9, %s3696_s19 }
 0x265   : > { %1455 = vrot.lane.b32.xlu0 %v1228_v0, %s3698_s25  ;;  %v3233_v0 = vld [vmem:[%s5627_s5 + $0x2] ss:$0 sm:$0xff] }
 0x269   : > { %1395 = vrot.lane.b32.xlu0 %v1351_v36, %s3696_s19 }
 0x26d   : > { %1459 = vrot.lane.b32.xlu0 %v1230_v35, %s3698_s25 }
 0x271   : > { %1399 = vrot.lane.b32.xlu0 %v1353_v18, %s3696_s19 }
 0x275   : > { %1463 = vrot.lane.b32.xlu0 %v1232_v33, %s3698_s25 }
 0x279   : > { %1240 = vrot.lane.b32.xlu0 %v3233_v0, %s3696_s19 }
 0x290   : > { %v1438_v5 = vpop.permute.xlu1 %1437 }
 0x292   : > { %v1436_v50 = vpop.permute.xlu0 %1435 }
 0x296   : > { %v1442_v10 = vpop.permute.xlu1 %1441 }
 0x298   : > { %v1440_v32 = vpop.permute.xlu0 %1439 }
 0x29a   : > { %v1374_v44 = vpop.permute.xlu1 %1373 }
 0x29b   : > { %v1484_v9 = vsel %vm980_vm13, %v4230_v22, %v1374_v44 }
 0x29c   : > { %v1376_v56 = vpop.permute.xlu0 %1375  ;;  %v1501_v25 = vsel %vm1499_vm1, %v1484_v9, %v1438_v5 }
 0x29d   : > { %v1485_v18 = vsel %vm980_vm13, %v1293_v52, %v1376_v56 }
 0x29e   : > { %v1446_v35 = vpop.permute.xlu1 %1445  ;;  %v1502_v44 = vsel %vm1499_vm1, %v1485_v18, %v1440_v32 }
 0x2a0   : > { %v1444_v55 = vpop.permute.xlu0 %1443 }
 0x2a2   : > { %v1378_v14 = vpop.permute.xlu1 %1377 }
 0x2a3   : > { %v1486_v22 = vsel %vm980_vm13, %v4255_v38, %v1378_v14  ;;  %v1297_v38 = vsel %vm5657_vm6, %v4312_v13, 0.0  ;;  %vm430_vm6 = vcmp.ge.s32.totalorder %v3910_v3, 4 }
 0x2a4   : > { %v1380_v12 = vpop.permute.xlu0 %1379  ;;  %v1503_v5 = vsel %vm1499_vm1, %v1486_v22, %v1442_v10 }
 0x2a5   : > { %v1487_v56 = vsel %vm980_vm13, %v1295_v37, %v1380_v12 }
 0x2a6   : > { %v1450_v49 = vpop.permute.xlu1 %1449 }
 0x2a8   : > { %v1448_v33 = vpop.permute.xlu0 %1447 }
 0x2aa   : > { %v1382_v20 = vpop.permute.xlu1 %1381 }
 0x2ac   : > { %v1384_v31 = vpop.permute.xlu0 %1383 }
 0x2ae   : > { %v1386_v29 = vpop.permute.xlu1 %1385 }
 0x2af   : > { %v1490_v10 = vsel %vm980_vm13, %v4324_v23, %v1386_v29  ;;  %v1301_v29 = vsel %vm422_vm12, %v4412_v46, 0.0  ;;  %v1303_v46 = vsel %vm5659_vm8, %v4426_v57, 0.0  ;;  %v1305_v57 = vsel %vm426_vm0, %v4458_v11, 0.0 }
 0x2b0   : > { %v1507_v12 = vsel %vm1499_vm1, %v1490_v10, %v1450_v49  ;;  %v5661_v10 = vld [vmem:[#allocation3_spill] sm:$0xff]  ;;  %vm432_vm8 = vcmp.ge.s32.totalorder %v3983_v43, 4 }
 0x2b3   : > { %v1390_v61 = vpop.permute.xlu1 %1389 }
 0x2b4   : > { %v1492_v23 = vsel %vm980_vm13, %v4362_v21, %v1390_v61 }
 0x2b7   : > { %v1454_v51 = vpop.permute.xlu1 %1453 }
 0x2bd   : > { %v1394_v0 = vpop.permute.xlu1 %1393 }
 0x2c7   : > { %v1372_v36 = vpop.permute.xlu0 %1371 }
 0x2c8   : > { %v1483_v26 = vsel %vm980_vm13, %v1291_v27, %v1372_v36  ;;  %v1494_v36 = vsel %vm980_vm13, %v4408_v45, %v1394_v0 }
 0x2c9   : > { %v1500_v62 = vsel %vm1499_vm1, %v1483_v26, %v1436_v50  ;;  %v1458_v26 = vpop.permute.xlu1 %1457  ;;  %v1489_v50 = vsel %vm980_vm13, %v1297_v38, %v1384_v31 }
 0x2ca   : > { %3498 = vmatprep.mubr.msk.f32.mxu0 %vm1533_vm4, %v1500_v62  ;;  %v1488_v62 = vsel %vm980_vm13, %v4284_v63, %v1382_v20  ;;  %v1506_v63 = vsel %vm1499_vm1, %v1489_v50, %v1448_v33  ;;  %v1511_v21 = vsel %vm1499_vm1, %v1494_v36, %v1458_v26 }
 0x2cb   : > { %v1388_v4 = vpop.permute.xlu0 %1387  ;;  %3499 = vmatmul.mubr.msk.f32.vlgmr.msra.gmra.mxu0 %vm1533_vm4, %v1501_v25  ;;  %v1504_v25 = vsel %vm1499_vm1, %v1487_v56, %v1444_v55  ;;  %v1505_v32 = vsel %vm1499_vm1, %v1488_v62, %v1446_v35  ;;  %v1299_v55 = vsel %vm5658_vm7, %v4366_v39, 0.0  ;;  %v1509_v39 = vsel %vm1499_vm1, %v1492_v23, %v1454_v51 }
 0x2cc   : > { %3501 = vmatprep.mubr.msk.f32.mxu0 %vm1533_vm4, %v1502_v44  ;;  %v1491_v20 = vsel %vm980_vm13, %v1299_v55, %v1388_v4  ;;  %vm428_vm7 = vcmp.ge.s32.totalorder %v3865_v48, 4 }
 0x2cd   : > { %v1398_v13 = vpop.permute.xlu1 %1397 }
 0x2ce   : > { %v1496_v22 = vsel %vm980_vm13, %v4422_v1, %v1398_v13 }
 0x2cf   : > { %v1452_v60 = vpop.permute.xlu0 %1451  ;;  %3502 = vmatmul.mubr.msk.f32.gmra.mxu0 %vm1533_vm4, %v1503_v5 }
 0x2d0   : > { %3504 = vmatprep.mubr.msk.f32.mxu0 %vm1533_vm4, %v1504_v25  ;;  %v1508_v35 = vsel %vm1499_vm1, %v1491_v20, %v1452_v60 }
 0x2d1   : > { %v1462_v33 = vpop.permute.xlu1 %1461 }
 0x2d2   : > { %v1513_v45 = vsel %vm1499_vm1, %v1496_v22, %v1462_v33 }
 0x2d3   : > { %v1392_v14 = vpop.permute.xlu0 %1391  ;;  %3505 = vmatmul.mubr.msk.f32.gmra.mxu0 %vm1533_vm4, %v1505_v32 }
 0x2d4   : > { %3507 = vmatprep.mubr.msk.f32.mxu0 %vm1533_vm4, %v1506_v63  ;;  %v1493_v9 = vsel %vm980_vm13, %v1301_v29, %v1392_v14  ;;  %v2138_v29 = vld [vmem:[%s5628_s6 + $0x50] sm:$0xff] }
 0x2d5   : > { %v1402_v27 = vpop.permute.xlu1 %1401 }
 0x2d6   : > { %v1498_v56 = vsel %vm980_vm13, %v4454_v19, %v1402_v27 }
 0x2d7   : > { %v1456_v31 = vpop.permute.xlu0 %1455  ;;  %3508 = vmatmul.mubr.msk.f32.gmra.mxu0 %vm1533_vm4, %v1507_v12 }
 0x2d8   : > { %3510 = vmatprep.mubr.msk.f32.mxu0 %vm1533_vm4, %v1508_v35  ;;  %v1510_v49 = vsel %vm1499_vm1, %v1493_v9, %v1456_v31 }
 0x2d9   : > { %v1466_v37 = vpop.permute.xlu1 %1465 }
 0x2da   : > { %v1515_v26 = vsel %vm1499_vm1, %v1498_v56, %v1466_v37 }
 0x2db   : > { %v1396_v52 = vpop.permute.xlu0 %1395  ;;  %3511 = vmatmul.mubr.msk.f32.gmra.mxu0 %vm1533_vm4, %v1509_v39 }
 0x2dc   : > { %3513 = vmatprep.mubr.msk.f32.mxu0 %vm1533_vm4, %v1510_v49  ;;  %v1495_v61 = vsel %vm980_vm13, %v1303_v46, %v1396_v52 }
 0x2df   : > { %v1460_v51 = vpop.permute.xlu0 %1459  ;;  %3514 = vmatmul.mubr.msk.f32.gmra.mxu0 %vm1533_vm4, %v1511_v21 }
 0x2e0   : > { %v1512_v18 = vsel %vm1499_vm1, %v1495_v61, %v1460_v51  ;;  %v2137_v61 = vld [vmem:[%s5628_s6 + $0x48] sm:$0xff] }
 0x2e1   : > { %3516 = vmatprep.mubr.msk.f32.mxu0 %vm1533_vm4, %v1512_v18 }
 0x2e3   : > { %3517 = vmatmul.mubr.msk.f32.gmra.mxu0 %vm1533_vm4, %v1513_v45  ;;  %v1400_v0 = vpop.permute.xlu0 %1399 }
 0x2e4   : > { %v1497_v4 = vsel %vm980_vm13, %v1305_v57, %v1400_v0 }
 0x2e7   : > { %v1464_v44 = vpop.permute.xlu0 %1463 }
 0x2e8   : > { %v1514_v1 = vsel %vm1499_vm1, %v1497_v4, %v1464_v44  ;;  %v2136_v44 = vld [vmem:[%s5628_s6 + $0x40] sm:$0xff] }
 0x2e9   : > { %3519 = vmatprep.mubr.msk.f32.mxu0 %vm1533_vm4, %v1514_v1 }
 0x2ea   : > { %3520 = vmatmul.mubr.msk.f32.gmra.mxu0 %vm1533_vm4, %v1515_v26  ;;  %v2135_v26 = vld [vmem:[%s5628_s6 + $0x38] sm:$0xff] }
 0x2eb   : > { %v1241_v5 = vpop.permute.xlu0 %1240 }
 0x2ec   : > { %v1258_v62 = vadd.f32 %v4414_v54, %v1241_v5  ;;  %v1243_v38 = vadd.f32 %v1241_v5, %v4207_v6  ;;  %v1245_v11 = vadd.f32 %v1241_v5, %v4221_v15  ;;  %v1244_v19 = vadd.f32 %v4203_v30, %v1241_v5 }
 0x2ed   : > { %v1247_v60 = vadd.f32 %v1241_v5, %v4249_v42  ;;  %v1246_v25 = vadd.f32 %v4214_v8, %v1241_v5  ;;  %v1249_v50 = vadd.f32 %v1241_v5, %v4278_v58  ;;  %v1248_v54 = vadd.f32 %v4234_v34, %v1241_v5  ;;  %v5660_v34 = vld [vmem:[#allocation4_spill] sm:$0xff] }
 0x2ee   : > { %1789 = vrot.lane.b32.xlu0 %v1258_v62, %s3699_s21  ;;  %1759 = vrot.lane.b32.xlu1 %v1243_v38, %s3699_s21  ;;  %v1251_v6 = vadd.f32 %v1241_v5, %v4317_v16  ;;  %v1250_v15 = vadd.f32 %v4262_v53, %v1241_v5  ;;  %v1253_v30 = vadd.f32 %v1241_v5, %v4379_v59  ;;  %v4592_v59 = vld [vmem:[%s5627_s5 + $0x1] ss:$0 sm:$0xff] }
 0x2ef   : > { %v1252_v42 = vadd.f32 %v4301_v2, %v1241_v5  ;;  %v1255_v8 = vadd.f32 %v1241_v5, %v4394_v28  ;;  %v1254_v58 = vadd.f32 %v4369_v47, %v1241_v5  ;;  %v1257_v32 = vadd.f32 %v1241_v5, %v5660_v34  ;;  %v2139_v47 = vld [vmem:[%s5628_s6 + $0x58] sm:$0xff] }
 0x2f0   : > { %v1256_v16 = vadd.f32 %v5661_v10, %v1241_v5  ;;  %3522 = vmatprep.subr.mxu1 %v2139_v47 }
 0x2f1   : > { %3523 = vmatpush3.msra.mxu1 %v2139_v47 }
 0x2f2   : > { %1763 = vrot.lane.b32.xlu0 %v1245_v11, %s3699_s21  ;;  %1761 = vrot.lane.b32.xlu1 %v1244_v19, %s3699_s21 }
 0x2f3   : > { %3524 = vmatprep.subr.mxu1 %v2138_v29 }
 0x2f4   : > { %3525 = vmatpush3.msra.mxu1 %v2138_v29 }
 0x2f5   : > { %3526 = vmatprep.subr.mxu1 %v2137_v61 }
 0x2f6   : > { %1767 = vrot.lane.b32.xlu0 %v1247_v60, %s3699_s21  ;;  %1765 = vrot.lane.b32.xlu1 %v1246_v25, %s3699_s21 }
 0x2f7   : > { %3527 = vmatpush3.msra.mxu1 %v2137_v61 }
 0x2f8   : > { %3528 = vmatprep.subr.mxu1 %v2136_v44 }
 0x2f9   : > { %3529 = vmatpush3.msra.mxu1 %v2136_v44  ;;  %v2129_v44 = vld [vmem:[%s5628_s6 + $0x8] sm:$0xff] }
 0x2fa   : > { %1771 = vrot.lane.b32.xlu0 %v1249_v50, %s3699_s21  ;;  %1769 = vrot.lane.b32.xlu1 %v1248_v54, %s3699_s21 }
 0x2fb   : > { %3530 = vmatprep.subr.mxu1 %v2135_v26 }
 0x2fc   : > { %3531 = vmatpush3.msra.mxu1 %v2135_v26 }
 0x2fe   : > { %1775 = vrot.lane.b32.xlu0 %v1251_v6, %s3699_s21  ;;  %1773 = vrot.lane.b32.xlu1 %v1250_v15, %s3699_s21 }
 0x302   : > { %1779 = vrot.lane.b32.xlu0 %v1253_v30, %s3699_s21  ;;  %1777 = vrot.lane.b32.xlu1 %v1252_v42, %s3699_s21  ;;  %v5662_v30 = vld [vmem:[#allocation2_spill] sm:$0xff] }
 0x303   : > { %vm1855_vm5 = vcmp.lt.s32.totalorder %v5662_v30, 4 }
 0x306   : > { %1783 = vrot.lane.b32.xlu0 %v1255_v8, %s3699_s21  ;;  %1781 = vrot.lane.b32.xlu1 %v1254_v58, %s3699_s21  ;;  %v2134_v58 = vld [vmem:[%s5628_s6 + $0x30] sm:$0xff] }
 0x307   : > { %3532 = vmatprep.subr.mxu1 %v2134_v58 }
 0x308   : > { %3533 = vmatpush3.msra.mxu1 %v2134_v58 }
 0x30a   : > { %1787 = vrot.lane.b32.xlu0 %v1257_v32, %s3699_s21  ;;  %1785 = vrot.lane.b32.xlu1 %v1256_v16, %s3699_s21 }
 0x360   : > { %v1760_v53 = vpop.permute.xlu1 %1759  ;;  %v4598_v63 = vpop.permute.xlu0 %1789 }
 0x364   : > { %v1762_v14 = vpop.permute.xlu1 %1761  ;;  %v1764_v21 = vpop.permute.xlu0 %1763 }
 0x368   : > { %v1766_v33 = vpop.permute.xlu1 %1765  ;;  %v1768_v11 = vpop.permute.xlu0 %1767 }
 0x36c   : > { %v1770_v5 = vpop.permute.xlu1 %1769 }
 0x38b   : > { %v3500_v2 = vpop.f32.mrf.mxu0 }
 0x38c   : > { %v1654_v28 = vadd.f32 %v3500_v2, %v4592_v59 }
 0x38d   : > { %v1648_v13 = vpop.f32.mrf.mxu0 }
 0x38e   : > { %v1728_v55 = vmax.f32 %v1654_v28, 0.0  ;;  %v1649_v20 = vadd.f32 %v4592_v59, %v1648_v13  ;;  %v1772_v28 = vpop.permute.xlu0 %1771 }
 0x38f   : > { %v3503_v12 = vpop.f32.mrf.mxu0 }
 0x390   : > { %v1808_v35 = vadd.f32 %v1762_v14, %v1728_v55  ;;  %v1727_v31 = vmax.f32 %v1649_v20, 0.0  ;;  %v1664_v23 = vadd.f32 %v3503_v12, %v4592_v59  ;;  %v2133_v14 = vld [vmem:[%s5628_s6 + $0x28] sm:$0xff]  ;;  %v2132_v20 = vld [vmem:[%s5628_s6 + $0x20] sm:$0xff] }
 0x391   : > { %v1658_v39 = vpop.f32.mrf.mxu0  ;;  %3534 = vmatprep.subr.mxu1 %v2133_v14 }
 0x392   : > { %v4605_v9 = vmax.f32 %v1808_v35, 0.0  ;;  %v1807_v49 = vadd.f32 %v1760_v53, %v1727_v31  ;;  %v1730_v52 = vmax.f32 %v1664_v23, 0.0  ;;  %v1659_v36 = vadd.f32 %v4592_v59, %v1658_v39  ;;  %v1774_v31 = vpop.permute.xlu1 %1773  ;;  %3535 = vmatpush3.msra.mxu1 %v2133_v14 }
 0x393   : > { %v3506_v46 = vpop.f32.mrf.mxu0  ;;  %3536 = vmatprep.subr.mxu1 %v2132_v20 }
 0x394   : > { %v4611_v51 = vmax.f32 %v1807_v49, 0.0  ;;  %v1810_v27 = vadd.f32 %v1766_v33, %v1730_v52  ;;  %v1729_v18 = vmax.f32 %v1659_v36, 0.0  ;;  %v1674_v22 = vadd.f32 %v3506_v46, %v4592_v59  ;;  %2050 = vrot.lane.b32.xlu0 %v4605_v9, %s3698_s25  ;;  %3537 = vmatpush3.msra.mxu1 %v2132_v20  ;;  %v2131_v36 = vld [vmem:[%s5628_s6 + $0x18] sm:$0xff] }
 0x395   : > { %v1668_v45 = vpop.f32.mrf.mxu0  ;;  %v1921_v25 = vrot.slane %v4605_v9, 6  ;;  %3538 = vmatprep.subr.mxu1 %v2131_v36 }
 0x396   : > { %v4616_v0 = vmax.f32 %v1810_v27, 0.0  ;;  %v1809_v37 = vadd.f32 %v1764_v21, %v1729_v18  ;;  %v1732_v57 = vmax.f32 %v1674_v22, 0.0  ;;  %v1669_v4 = vadd.f32 %v4592_v59, %v1668_v45  ;;  %2048 = vrot.lane.b32.xlu1 %v4611_v51, %s3698_s25  ;;  %v2130_v27 = vld [vmem:[%s5628_s6 + $0x10] sm:$0xff]  ;;  %v1776_v22 = vpop.permute.xlu0 %1775  ;;  %3539 = vmatpush3.msra.mxu1 %v2131_v36 }
 0x397   : > { %v3509_v56 = vpop.f32.mrf.mxu0  ;;  %v1920_v1 = vrot.slane %v4611_v51, 6  ;;  %3540 = vmatprep.subr.mxu1 %v2130_v27 }
 0x398   : > { %v4628_v62 = vmax.f32 %v1809_v37, 0.0  ;;  %v1731_v38 = vmax.f32 %v1669_v4, 0.0  ;;  %2054 = vrot.lane.b32.xlu0 %v4616_v0, %s3698_s25  ;;  %v1812_v19 = vadd.f32 %v1770_v5, %v1732_v57  ;;  %v1684_v54 = vadd.f32 %v3509_v56, %v4592_v59  ;;  %v1778_v56 = vpop.permute.xlu1 %1777  ;;  %3541 = vmatpush3.msra.mxu1 %v2130_v27 }
 0x399   : > { %v1678_v60 = vpop.f32.mrf.mxu0  ;;  %v1950_v42 = vsel %vm689_vm2, %v1920_v1, %v1921_v25  ;;  %v1923_v39 = vrot.slane %v4616_v0, 6  ;;  %3542 = vmatprep.subr.mxu1 %v2129_v44 }
 0x39a   : > { %v1811_v50 = vadd.f32 %v1768_v11, %v1731_v38  ;;  %v1679_v6 = vadd.f32 %v4592_v59, %v1678_v60  ;;  %2052 = vrot.lane.b32.xlu1 %v4628_v62, %s3698_s25  ;;  %v1922_v8 = vrot.slane %v4628_v62, 6  ;;  %v4650_v53 = vmax.f32 %v1812_v19, 0.0  ;;  %3543 = vmatpush3.msra.mxu1 %v2129_v44  ;;  %v1780_v58 = vpop.permute.xlu0 %1779 }
 0x39b   : > { %v3512_v15 = vpop.f32.mrf.mxu0  ;;  %v1734_v2 = vmax.f32 %v1684_v54, 0.0 }
 0x39c   : > { %v4645_v34 = vmax.f32 %v1811_v50, 0.0  ;;  %v1733_v32 = vmax.f32 %v1679_v6, 0.0  ;;  %1986 = vrot.lane.b32.xlu0 %v1950_v42, %s3696_s19  ;;  %v1949_v16 = vsel %vm689_vm2, %v1921_v25, %v1922_v8  ;;  %v1694_v23 = vadd.f32 %v3512_v15, %v4592_v59  ;;  %v2128_v15 = vld [vmem:[%s5628_s6] sm:$0xff]  ;;  %v1782_v20 = vpop.permute.xlu1 %1781 }
 0x39d   : > { %v1688_v10 = vpop.f32.mrf.mxu0  ;;  %v1954_v13 = vsel %vm414_vm15, %v1949_v16, 0.0  ;;  %v1814_v33 = vadd.f32 %v1774_v31, %v1734_v2  ;;  %v1948_v52 = vsel %vm689_vm2, %v1922_v8, %v1923_v39  ;;  %v1925_v19 = vrot.slane %v4650_v53, 6  ;;  %3544 = vmatprep.subr.mxu1 %v2128_v15 }
 0x39e   : > { %v1689_v47 = vadd.f32 %v4592_v59, %v1688_v10  ;;  %v1813_v12 = vadd.f32 %v1772_v28, %v1733_v32  ;;  %1988 = vrot.lane.b32.xlu1 %v1954_v13, %s3696_s19  ;;  %v1924_v35 = vrot.slane %v4645_v34, 6  ;;  %v1736_v18 = vmax.f32 %v1694_v23, 0.0  ;;  %3545 = vmatpush3.msra.mxu1 %v2128_v15 }
 0x39f   : > { %v3515_v55 = vpop.f32.mrf.mxu0  ;;  %v4682_v45 = vmax.f32 %v1814_v33, 0.0 }
 0x3a0   : > { %2058 = vrot.lane.b32.xlu0 %v4650_v53, %s3698_s25  ;;  %v1735_v49 = vmax.f32 %v1689_v47, 0.0  ;;  %v4672_v21 = vmax.f32 %v1813_v12, 0.0  ;;  %v1947_v61 = vsel %vm689_vm2, %v1923_v39, %v1924_v35  ;;  %v1816_v38 = vadd.f32 %v1778_v56, %v1736_v18 }
 0x3a1   : > { %v1698_v29 = vpop.f32.mrf.mxu0  ;;  %v1956_v4 = vsel %vm5663_vm9, %v1947_v61, 0.0  ;;  %v1704_v11 = vadd.f32 %v3515_v55, %v4592_v59  ;;  %v1946_v6 = vsel %vm689_vm2, %v1924_v35, %v1925_v19  ;;  %v1927_v8 = vrot.slane %v4682_v45, 6  ;;  %v1784_v61 = vpop.permute.xlu0 %1783 }
 0x3a2   : > { %2056 = vrot.lane.b32.xlu1 %v4645_v34, %s3698_s25  ;;  %v1699_v37 = vadd.f32 %v4592_v59, %v1698_v29  ;;  %v1815_v57 = vadd.f32 %v1776_v22, %v1735_v49  ;;  %v1926_v5 = vrot.slane %v4672_v21, 6  ;;  %v4710_v32 = vmax.f32 %v1816_v38, 0.0 }
 0x3a3   : > { %v3518_v46 = vpop.f32.mrf.mxu0  ;;  %v1738_v10 = vmax.f32 %v1704_v11, 0.0  ;;  %vm434_vm9 = vcmp.ge.s32.totalorder %v4024_v41, 4 }
 0x3a4   : > { %1990 = vrot.lane.b32.xlu0 %v1948_v52, %s3696_s19  ;;  %v1737_v60 = vmax.f32 %v1699_v37, 0.0  ;;  %v4696_v50 = vmax.f32 %v1815_v57, 0.0  ;;  %v1945_v42 = vsel %vm689_vm2, %v1925_v19, %v1926_v5  ;;  %v1944_v14 = vsel %vm689_vm2, %v1926_v5, %v1927_v8 }
 0x3a5   : > { %v1708_v26 = vpop.f32.mrf.mxu0  ;;  %v1958_v13 = vsel %vm5664_vm10, %v1945_v42, 0.0  ;;  %v1818_v12 = vadd.f32 %v1782_v20, %v1738_v10  ;;  %v1714_v35 = vadd.f32 %v3518_v46, %v4592_v59  ;;  %v1929_v23 = vrot.slane %v4710_v32, 6  ;;  %v1788_v11 = vpop.permute.xlu0 %1787 }
 0x3a6   : > { %1992 = vrot.lane.b32.xlu1 %v1956_v4, %s3696_s19  ;;  %v1817_v2 = vadd.f32 %v1780_v58, %v1737_v60  ;;  %v1709_v28 = vadd.f32 %v4592_v59, %v1708_v26  ;;  %v1928_v55 = vrot.slane %v4696_v50, 6  ;;  %v1786_v4 = vpop.permute.xlu1 %1785  ;;  %vm436_vm10 = vcmp.ge.s32.totalorder %v4041_v7, 4 }
 0x3a7   : > { %v4731_v52 = vmax.f32 %v1818_v12, 0.0  ;;  %v1740_v36 = vmax.f32 %v1714_v35, 0.0 }
 0x3a8   : > { %2062 = vrot.lane.b32.xlu0 %v4682_v45, %s3698_s25  ;;  %v4725_v29 = vmax.f32 %v1817_v2, 0.0  ;;  %v1942_v39 = vsel %vm689_vm2, %v1928_v55, %v1929_v23  ;;  %v1943_v37 = vsel %vm689_vm2, %v1927_v8, %v1928_v55 }
 0x3a9   : > { %v1820_v44 = vadd.f32 %v1786_v4, %v1740_v36  ;;  %v1960_v56 = vsel %vm5666_vm14, %v1943_v37, 0.0  ;;  %v1843_v4 = vrot.slane %v4645_v34, 4  ;;  %vm5646_vm14 = vcmp.ge.s32.totalorder %v4056_v17, 4 }
 0x3aa   : > { %v3521_v25 = vpop.f32.mrf.mxu0  ;;  %2060 = vrot.lane.b32.xlu1 %v4672_v21, %s3698_s25  ;;  %v1930_v57 = vrot.slane %v4725_v29, 6 }
 0x3ab   : > { %v1724_v54 = vadd.f32 %v3521_v25, %v4592_v59  ;;  %v4755_v38 = vmax.f32 %v1820_v44, 0.0 }
 0x3ac   : > { %1994 = vrot.lane.b32.xlu0 %v1946_v6, %s3696_s19  ;;  %v1718_v49 = vpop.f32.mrf.mxu0  ;;  %v1941_v60 = vsel %vm689_vm2, %v1929_v23, %v1930_v57 }
 0x3ad   : > { %v1742_v16 = vmax.f32 %v1724_v54, 0.0  ;;  %v1719_v22 = vadd.f32 %v4592_v59, %v1718_v49  ;;  %v1933_v54 = vrot.slane %v4755_v38, 6  ;;  %v1962_v6 = vsel %vm422_vm12, %v1941_v60, 0.0 }
 0x3ae   : > { %1996 = vrot.lane.b32.xlu1 %v1958_v13, %s3696_s19 }
 0x3af   : > { %v1822_v47 = vadd.f32 %v4598_v63, %v1742_v16  ;;  %v1739_v63 = vmax.f32 %v1709_v28, 0.0  ;;  %v1741_v59 = vmax.f32 %v1719_v22, 0.0  ;;  %v1840_v22 = vrot.slane %v4605_v9, 4 }
 0x3b0   : > { %1998 = vrot.lane.b32.xlu0 %v1944_v14, %s3696_s19 }
 0x3b1   : > { %v4722_v31 = vmax.f32 %v1822_v47, 0.0  ;;  %v1819_v18 = vadd.f32 %v1784_v61, %v1739_v63  ;;  %v1821_v19 = vadd.f32 %v1788_v11, %v1741_v59  ;;  %v1842_v59 = vrot.slane %v4616_v0, 4 }
 0x3b3   : > { %v1935_v33 = vrot.slane %v4722_v31, 6  ;;  %v4749_v26 = vmax.f32 %v1819_v18, 0.0  ;;  %v4767_v15 = vmax.f32 %v1821_v19, 0.0  ;;  %v1839_v18 = vrot.slane %v4611_v51, 4 }
 0x3b4   : > { %2002 = vrot.lane.b32.xlu0 %v1942_v39, %s3696_s19 }
 0x3b5   : > { %v1951_v46 = vsel %vm689_vm2, %v1935_v33, %v1920_v1  ;;  %v1931_v1 = vrot.slane %v4731_v52, 6  ;;  %5667 = vst [vmem:[#allocation4_spill] sm:$0xff] %v4749_v26  ;;  %v1932_v25 = vrot.slane %v4749_v26, 6  ;;  %5668 = vst [vmem:[#allocation3_spill] sm:$0xff] %v4767_v15  ;;  %v1934_v58 = vrot.slane %v4767_v15, 6 }
 0x3b6   : > { %v1952_v27 = vsel %vm5665_vm11, %v1951_v46, 0.0  ;;  %v1841_v46 = vrot.slane %v4628_v62, 4  ;;  %vm438_vm11 = vcmp.ge.s32.totalorder %v4068_v24, 4 }
 0x3b7   : > { %1984 = vrot.lane.b32.xlu1 %v1952_v27, %s3696_s19  ;;  %v1940_v5 = vsel %vm689_vm2, %v1930_v57, %v1931_v1  ;;  %v1938_v42 = vsel %vm689_vm2, %v1932_v25, %v1933_v54  ;;  %v1939_v8 = vsel %vm689_vm2, %v1931_v1, %v1932_v25  ;;  %v1936_v16 = vsel %vm689_vm2, %v1934_v58, %v1935_v33 }
 0x3b8   : > { %2066 = vrot.lane.b32.xlu0 %v4710_v32, %s3698_s25  ;;  %v1964_v10 = vsel %vm5669_vm3, %v1939_v8, 0.0  ;;  %v1937_v2 = vsel %vm689_vm2, %v1933_v54, %v1934_v58  ;;  %v1854_v27 = vrot.slane %v4722_v31, 4  ;;  %v1869_v57 = vsel %vm1855_vm5, %v1840_v22, %v1841_v46 }
 0x3b9   : > { %v1966_v14 = vsel %vm426_vm0, %v1937_v2, 0.0  ;;  %v1906_v11 = vsel %vm430_vm6, %v1869_v57, 0.0  ;;  %v1867_v54 = vsel %vm1855_vm5, %v1842_v59, %v1843_v4  ;;  %v1844_v2 = vrot.slane %v4650_v53, 4 }
 0x3ba   : > { %v1871_v1 = vsel %vm1855_vm5, %v1854_v27, %v1839_v18  ;;  %vm442_vm3 = vcmp.ge.s32.totalorder %v4086_v40, 4 }
 0x3bb   : > { %2000 = vrot.lane.b32.xlu1 %v1960_v56, %s3696_s19  ;;  %v1870_v56 = vsel %vm1855_vm5, %v1839_v18, %v1840_v22  ;;  %v1904_v60 = vsel %vm428_vm7, %v1871_v1, 0.0  ;;  %v1847_v22 = vrot.slane %v4696_v50, 4 }
 0x3bc   : > { %2006 = vrot.lane.b32.xlu0 %v1940_v5, %s3696_s19 }
 0x3bf   : > { %2064 = vrot.lane.b32.xlu1 %v4696_v50, %s3698_s25 }
 0x3c0   : > { %2070 = vrot.lane.b32.xlu0 %v4731_v52, %s3698_s25 }
 0x3c3   : > { %2004 = vrot.lane.b32.xlu1 %v1962_v6, %s3696_s19  ;;  %v1845_v6 = vrot.slane %v4672_v21, 4 }
 0x3c4   : > { %2010 = vrot.lane.b32.xlu0 %v1938_v42, %s3696_s19 }
 0x3c7   : > { %2068 = vrot.lane.b32.xlu1 %v4725_v29, %s3698_s25 }
 0x3c8   : > { %2074 = vrot.lane.b32.xlu0 %v4755_v38, %s3698_s25 }
 0x3cb   : > { %2008 = vrot.lane.b32.xlu1 %v1964_v10, %s3696_s19 }
 0x3cc   : > { %2014 = vrot.lane.b32.xlu0 %v1936_v16, %s3696_s19  ;;  %v1868_v16 = vsel %vm1855_vm5, %v1841_v46, %v1842_v59 }
 0x3cf   : > { %2072 = vrot.lane.b32.xlu1 %v4749_v26, %s3698_s25 }
 0x3d0   : > { %2078 = vrot.lane.b32.xlu0 %v4722_v31, %s3698_s25 }
 0x3d3   : > { %2012 = vrot.lane.b32.xlu1 %v1966_v14, %s3696_s19 }
 0x3d7   : > { %2076 = vrot.lane.b32.xlu1 %v4767_v15, %s3698_s25 }
 0x406   : > { %v2051_v28 = vpop.permute.xlu0 %2050 }
 0x408   : > { %v2049_v47 = vpop.permute.xlu1 %2048 }
 0x40a   : > { %v2055_v13 = vpop.permute.xlu0 %2054 }
 0x40c   : > { %v2053_v55 = vpop.permute.xlu1 %2052 }
 0x40e   : > { %v1987_v20 = vpop.permute.xlu0 %1986 }
 0x40f   : > { %v2097_v5 = vsel %vm980_vm13, %v1870_v56, %v1987_v20  ;;  %v1908_v20 = vsel %vm432_vm8, %v1867_v54, 0.0 }
 0x410   : > { %v1989_v12 = vpop.permute.xlu1 %1988  ;;  %v2113_v10 = vsel %vm1499_vm1, %v2097_v5, %v2051_v28  ;;  %v1865_v28 = vsel %vm1855_vm5, %v1844_v2, %v1845_v6  ;;  %v1846_v5 = vrot.slane %v4682_v45, 4 }
 0x411   : > { %v2098_v25 = vsel %vm980_vm13, %v1906_v11, %v1989_v12 }
 0x412   : > { %v4797_v35 = vpop.permute.xlu0 %2058  ;;  %v2114_v18 = vsel %vm1499_vm1, %v2098_v25, %v2053_v55  ;;  %v1910_v55 = vsel %vm434_vm9, %v1865_v28, 0.0  ;;  %v1848_v25 = vrot.slane %v4710_v32, 4 }
 0x414   : > { %v2057_v23 = vpop.permute.xlu1 %2056 }
 0x416   : > { %v1991_v63 = vpop.permute.xlu0 %1990 }
 0x417   : > { %v2099_v14 = vsel %vm980_vm13, %v1868_v16, %v1991_v63  ;;  %v1866_v63 = vsel %vm1855_vm5, %v1843_v4, %v1844_v2  ;;  %v1849_v4 = vrot.slane %v4725_v29, 4  ;;  %v1862_v16 = vsel %vm1855_vm5, %v1847_v22, %v1848_v25 }
 0x418   : > { %v1993_v39 = vpop.permute.xlu1 %1992  ;;  %v2115_v57 = vsel %vm1499_vm1, %v2099_v14, %v2055_v13  ;;  %v1864_v13 = vsel %vm1855_vm5, %v1845_v6, %v1846_v5  ;;  %v1850_v14 = vrot.slane %v4731_v52, 4 }
 0x41a   : > { %v4799_v33 = vpop.permute.xlu0 %2062 }
 0x41c   : > { %v2061_v36 = vpop.permute.xlu1 %2060 }
 0x41e   : > { %v1995_v49 = vpop.permute.xlu0 %1994 }
 0x41f   : > { %v2101_v1 = vsel %vm980_vm13, %v1866_v63, %v1995_v49  ;;  %v1863_v49 = vsel %vm1855_vm5, %v1846_v5, %v1847_v22 }
 0x420   : > { %v1997_v37 = vpop.permute.xlu1 %1996  ;;  %v1912_v6 = vsel %vm436_vm10, %v1863_v49, 0.0 }
 0x421   : > { %v2102_v59 = vsel %vm980_vm13, %v1910_v55, %v1997_v37 }
 0x422   : > { %v1999_v61 = vpop.permute.xlu0 %1998 }
 0x423   : > { %v2103_v37 = vsel %vm980_vm13, %v1864_v13, %v1999_v61 }
 0x424   : > { %v2119_v61 = vsel %vm1499_vm1, %v2103_v37, %v4799_v33 }
 0x426   : > { %v4810_v44 = vpop.permute.xlu0 %2002 }
 0x427   : > { %v2105_v2 = vsel %vm980_vm13, %v1862_v16, %v4810_v44  ;;  %v1860_v44 = vsel %vm1855_vm5, %v1849_v4, %v1850_v14 }
 0x429   : > { %v1985_v19 = vpop.permute.xlu1 %1984 }
 0x42a   : > { %v2096_v42 = vsel %vm980_vm13, %v1904_v60, %v1985_v19  ;;  %v2067_v8 = vpop.permute.xlu0 %2066  ;;  %v2118_v60 = vsel %vm1499_vm1, %v2102_v59, %v2061_v36 }
 0x42b   : > { %v2112_v58 = vsel %vm1499_vm1, %v2096_v42, %v2049_v47  ;;  %v2100_v47 = vsel %vm980_vm13, %v1908_v20, %v1993_v39  ;;  %v2121_v20 = vsel %vm1499_vm1, %v2105_v2, %v2067_v8 }
 0x42c   : > { %3546 = vmatprep.mubr.msk.f32.mxu1 %vm1533_vm4, %v2112_v58  ;;  %v2116_v56 = vsel %vm1499_vm1, %v2100_v47, %v2057_v23  ;;  %v2117_v23 = vsel %vm1499_vm1, %v2101_v1, %v4797_v35  ;;  %v1861_v35 = vsel %vm1855_vm5, %v1848_v25, %v1849_v4  ;;  %v1851_v58 = vrot.slane %v4749_v26, 4 }
 0x42d   : > { %v2001_v12 = vpop.permute.xlu1 %2000  ;;  %3547 = vmatmul.mubr.msk.f32.vlgmr.msra.gmra.mxu1 %vm1533_vm4, %v2113_v10  ;;  %v1914_v33 = vsel %vm438_vm11, %v1861_v35, 0.0  ;;  %v2621_v35 = vld [vmem:[%s5629_s7 + $0x58] sm:$0xff] }
 0x42e   : > { %v2007_v46 = vpop.permute.xlu0 %2006  ;;  %3549 = vmatprep.mubr.msk.f32.mxu1 %vm1533_vm4, %v2114_v18  ;;  %v2104_v42 = vsel %vm980_vm13, %v1912_v6, %v2001_v12  ;;  %v1859_v28 = vsel %vm1855_vm5, %v1850_v14, %v1851_v58  ;;  %3570 = vmatprep.subr.mxu0 %v2621_v35  ;;  %v2620_v14 = vld [vmem:[%s5629_s7 + $0x50] sm:$0xff] }
 0x42f   : > { %v2107_v8 = vsel %vm980_vm13, %v1860_v44, %v2007_v46  ;;  %v1916_v1 = vsel %vm5646_vm14, %v1859_v28, 0.0  ;;  %3620 = vmatprep.subr.mxu1 %v2621_v35  ;;  %3571 = vmatpush3.msra.mxu0 %v2621_v35  ;;  %v2618_v44 = vld [vmem:[%s5629_s7 + $0x40] sm:$0xff]  ;;  %vm5674_vm14 = vcmp.ge.s32.totalorder %v3865_v48, 2 }
 0x430   : > { %3632 = vmatpush3.msra.mxu1 %v2621_v35  ;;  %3572 = vmatprep.subr.mxu0 %v2620_v14 }
 0x431   : > { %v2065_v39 = vpop.permute.xlu1 %2064  ;;  %3550 = vmatmul.mubr.msk.f32.gmra.mxu1 %vm1533_vm4, %v2115_v57  ;;  %v1852_v57 = vrot.slane %v4755_v38, 4  ;;  %3573 = vmatpush3.msra.mxu0 %v2620_v14 }
 0x432   : > { %v2071_v11 = vpop.permute.xlu0 %2070  ;;  %3552 = vmatprep.mubr.msk.f32.mxu1 %vm1533_vm4, %v2116_v56  ;;  %v2120_v36 = vsel %vm1499_vm1, %v2104_v42, %v2065_v39  ;;  %v1853_v39 = vrot.slane %v4767_v15, 4  ;;  %3621 = vmatprep.subr.mxu1 %v2620_v14 }
 0x433   : > { %v2123_v22 = vsel %vm1499_vm1, %v2107_v8, %v2071_v11  ;;  %v1858_v59 = vsel %vm1855_vm5, %v1851_v58, %v1852_v57  ;;  %3633 = vmatpush3.msra.mxu1 %v2620_v14 }
 0x434   : > { %v1857_v4 = vsel %vm1855_vm5, %v1852_v57, %v1853_v39 }
 0x435   : > { %v2005_v19 = vpop.permute.xlu1 %2004  ;;  %3553 = vmatmul.mubr.msk.f32.gmra.mxu1 %vm1533_vm4, %v2117_v23  ;;  %v1918_v37 = vsel %vm442_vm3, %v1857_v4, 0.0 }
 0x436   : > { %v2011_v54 = vpop.permute.xlu0 %2010  ;;  %3555 = vmatprep.mubr.msk.f32.mxu1 %vm1533_vm4, %v2118_v60  ;;  %v2106_v12 = vsel %vm980_vm13, %v1914_v33, %v2005_v19  ;;  %v1856_v19 = vsel %vm1855_vm5, %v1853_v39, %v1854_v27  ;;  %v4937_v27 = vld [vmem:[%s5630_s8] ss:$0 sm:$0xff]  ;;  %v2619_v33 = vld [vmem:[%s5629_s7 + $0x48] sm:$0xff] }
 0x437   : > { %v2109_v11 = vsel %vm980_vm13, %v1858_v59, %v2011_v54  ;;  %3574 = vmatprep.subr.mxu0 %v2619_v33  ;;  %3622 = vmatprep.subr.mxu1 %v2619_v33 }
 0x438   : > { %3575 = vmatpush3.msra.mxu0 %v2619_v33  ;;  %3634 = vmatpush3.msra.mxu1 %v2619_v33 }
 0x439   : > { %v2069_v10 = vpop.permute.xlu1 %2068  ;;  %3556 = vmatmul.mubr.msk.f32.gmra.mxu1 %vm1533_vm4, %v2119_v61  ;;  %3576 = vmatprep.subr.mxu0 %v2618_v44 }
 0x43a   : > { %3558 = vmatprep.mubr.msk.f32.mxu1 %vm1533_vm4, %v2120_v36  ;;  %v2075_v18 = vpop.permute.xlu0 %2074  ;;  %v2122_v47 = vsel %vm1499_vm1, %v2106_v12, %v2069_v10  ;;  %3577 = vmatpush3.msra.mxu0 %v2618_v44 }
 0x43b   : > { %v2125_v13 = vsel %vm1499_vm1, %v2109_v11, %v2075_v18  ;;  %3623 = vmatprep.subr.mxu1 %v2618_v44 }
 0x43c   : > { %3635 = vmatpush3.msra.mxu1 %v2618_v44 }
 0x43d   : > { %v2009_v63 = vpop.permute.xlu1 %2008  ;;  %3559 = vmatmul.mubr.msk.f32.gmra.mxu1 %vm1533_vm4, %v2121_v20 }
 0x43e   : > { %3561 = vmatprep.mubr.msk.f32.mxu1 %vm1533_vm4, %v2122_v47  ;;  %v2108_v55 = vsel %vm980_vm13, %v1916_v1, %v2009_v63  ;;  %v2015_v5 = vpop.permute.xlu0 %2014 }
 0x43f   : > { %v2111_v54 = vsel %vm980_vm13, %v1856_v19, %v2015_v5  ;;  %v2616_v19 = vld [vmem:[%s5629_s7 + $0x30] sm:$0xff] }
 0x441   : > { %v2073_v56 = vpop.permute.xlu1 %2072  ;;  %3562 = vmatmul.mubr.msk.f32.gmra.mxu1 %vm1533_vm4, %v2123_v22 }
 0x442   : > { %v2124_v46 = vsel %vm1499_vm1, %v2108_v55, %v2073_v56  ;;  %v2079_v23 = vpop.permute.xlu0 %2078 }
 0x443   : > { %3564 = vmatprep.mubr.msk.f32.mxu1 %vm1533_vm4, %v2124_v46  ;;  %v2127_v42 = vsel %vm1499_vm1, %v2111_v54, %v2079_v23 }
 0x445   : > { %3565 = vmatmul.mubr.msk.f32.gmra.mxu1 %vm1533_vm4, %v2125_v13  ;;  %v2013_v49 = vpop.permute.xlu1 %2012 }
 0x446   : > { %v2110_v60 = vsel %vm980_vm13, %v1918_v37, %v2013_v49  ;;  %v2617_v37 = vld [vmem:[%s5629_s7 + $0x38] sm:$0xff] }
 0x447   : > { %3578 = vmatprep.subr.mxu0 %v2617_v37  ;;  %3624 = vmatprep.subr.mxu1 %v2617_v37 }
 0x448   : > { %3579 = vmatpush3.msra.mxu0 %v2617_v37  ;;  %3636 = vmatpush3.msra.mxu1 %v2617_v37 }
 0x449   : > { %v2077_v25 = vpop.permute.xlu1 %2076  ;;  %3580 = vmatprep.subr.mxu0 %v2616_v19  ;;  %3625 = vmatprep.subr.mxu1 %v2616_v19 }
 0x44a   : > { %v2126_v6 = vsel %vm1499_vm1, %v2110_v60, %v2077_v25  ;;  %3581 = vmatpush3.msra.mxu0 %v2616_v19  ;;  %3637 = vmatpush3.msra.mxu1 %v2616_v19 }
 0x44b   : > { %3567 = vmatprep.mubr.msk.f32.mxu1 %vm1533_vm4, %v2126_v6 }
 0x44c   : > { %3568 = vmatmul.mubr.msk.f32.gmra.mxu1 %vm1533_vm4, %v2127_v42 }
 0x4ed   : > { %v3548_v61 = vpop.f32.mrf.mxu1 }
 0x4ee   : > { %v2265_v36 = vadd.f32 %v3548_v61, %v4937_v27 }
 0x4ef   : > { %v2259_v58 = vpop.f32.mrf.mxu1 }
 0x4f0   : > { %v2339_v10 = vmax.f32 %v2265_v36, 0.0  ;;  %v2260_v16 = vadd.f32 %v4937_v27, %v2259_v58  ;;  %v2615_v58 = vld [vmem:[%s5629_s7 + $0x28] sm:$0xff] }
 0x4f1   : > { %v3551_v2 = vpop.f32.mrf.mxu1  ;;  %3582 = vmatprep.subr.mxu0 %v2615_v58  ;;  %3626 = vmatprep.subr.mxu1 %v2615_v58 }
 0x4f2   : > { %v4947_v20 = vmax.f32 %v2260_v16, 0.0  ;;  %v2275_v12 = vadd.f32 %v3551_v2, %v4937_v27  ;;  %2532 = vrot.lane.b32.xlu0 %v2339_v10, %s3698_s25  ;;  %v2355_v8 = vrot.slane %v2339_v10, 4  ;;  %v2403_v39 = vrot.slane %v2339_v10, 6  ;;  %3583 = vmatpush3.msra.mxu0 %v2615_v58 }
 0x4f3   : > { %v2269_v18 = vpop.f32.mrf.mxu1  ;;  %3638 = vmatpush3.msra.mxu1 %v2615_v58 }
 0x4f4   : > { %v5645_v47 = vrot.slane %v4947_v20, 4  ;;  %v4952_v28 = vmax.f32 %v2275_v12, 0.0  ;;  %v2270_v63 = vadd.f32 %v4937_v27, %v2269_v18  ;;  %2530 = vrot.lane.b32.xlu1 %v4947_v20, %s3698_s25  ;;  %v2402_v22 = vrot.slane %v4947_v20, 6 }
 0x4f5   : > { %v3554_v57 = vpop.f32.mrf.mxu1 }
 0x4f6   : > { %v2340_v1 = vmax.f32 %v2270_v63, 0.0  ;;  %v2285_v55 = vadd.f32 %v3554_v57, %v4937_v27  ;;  %2536 = vrot.lane.b32.xlu0 %v4952_v28, %s3698_s25  ;;  %v4968_v59 = vsel %vm1855_vm5, %v5645_v47, %v2355_v8  ;;  %v2357_v13 = vrot.slane %v4952_v28, 4 }
 0x4f7   : > { %v2279_v56 = vpop.f32.mrf.mxu1  ;;  %v2432_v23 = vsel %vm689_vm2, %v2402_v22, %v2403_v39  ;;  %v2405_v63 = vrot.slane %v4952_v28, 6 }
 0x4f8   : > { %v2356_v5 = vrot.slane %v2340_v1, 4  ;;  %v2404_v46 = vrot.slane %v2340_v1, 6  ;;  %v2280_v11 = vadd.f32 %v4937_v27, %v2279_v56  ;;  %2534 = vrot.lane.b32.xlu1 %v2340_v1, %s3698_s25  ;;  %v4973_v49 = vmax.f32 %v2285_v55, 0.0 }
 0x4f9   : > { %v3557_v4 = vpop.f32.mrf.mxu1 }
 0x4fa   : > { %v4985_v60 = vmax.f32 %v2280_v11, 0.0  ;;  %v2295_v25 = vadd.f32 %v3557_v4, %v4937_v27  ;;  %2468 = vrot.lane.b32.xlu0 %v2432_v23, %s3696_s19  ;;  %v2431_v6 = vsel %vm689_vm2, %v2403_v39, %v2404_v46  ;;  %v4993_v42 = vsel %vm1855_vm5, %v2355_v8, %v2356_v5  ;;  %v2614_v11 = vld [vmem:[%s5629_s7 + $0x20] sm:$0xff] }
 0x4fb   : > { %v2289_v54 = vpop.f32.mrf.mxu1  ;;  %v4997_v35 = vsel %vm1855_vm5, %v2356_v5, %v2357_v13  ;;  %v2359_v10 = vrot.slane %v4973_v49, 4  ;;  %v2436_v2 = vsel %vm414_vm15, %v2431_v6, 0.0  ;;  %v2430_v5 = vsel %vm689_vm2, %v2404_v46, %v2405_v63  ;;  %v2613_v46 = vld [vmem:[%s5629_s7 + $0x18] sm:$0xff]  ;;  %3584 = vmatprep.subr.mxu0 %v2614_v11  ;;  %3627 = vmatprep.subr.mxu1 %v2614_v11 }
 0x4fc   : > { %v2358_v61 = vrot.slane %v4985_v60, 4  ;;  %v2290_v36 = vadd.f32 %v4937_v27, %v2289_v54  ;;  %v5005_v16 = vmax.f32 %v2295_v25, 0.0  ;;  %v2406_v33 = vrot.slane %v4985_v60, 6  ;;  %2470 = vrot.lane.b32.xlu1 %v2436_v2, %s3696_s19  ;;  %3585 = vmatpush3.msra.mxu0 %v2614_v11 }
 0x4fd   : > { %v3560_v14 = vpop.f32.mrf.mxu1  ;;  %vm5670_vm15 = vcmp.ge.s32.totalorder %v3983_v43, 2  ;;  %3586 = vmatprep.subr.mxu0 %v2613_v46  ;;  %3639 = vmatpush3.msra.mxu1 %v2614_v11 }
 0x4fe   : > { %v5010_v12 = vmax.f32 %v2290_v36, 0.0  ;;  %v2305_v18 = vadd.f32 %v3560_v14, %v4937_v27  ;;  %2540 = vrot.lane.b32.xlu0 %v4973_v49, %s3698_s25  ;;  %v5019_v8 = vsel %vm1855_vm5, %v2357_v13, %v2358_v61  ;;  %v5023_v57 = vsel %vm1855_vm5, %v2358_v61, %v2359_v10  ;;  %v2612_v14 = vld [vmem:[%s5629_s7 + $0x10] sm:$0xff]  ;;  %3587 = vmatpush3.msra.mxu0 %v2613_v46 }
 0x4ff   : > { %v2299_v44 = vpop.f32.mrf.mxu1  ;;  %v2361_v39 = vrot.slane %v5005_v16, 4  ;;  %v2429_v23 = vsel %vm689_vm2, %v2405_v63, %v2406_v33  ;;  %3588 = vmatprep.subr.mxu0 %v2612_v14  ;;  %3628 = vmatprep.subr.mxu1 %v2613_v46  ;;  %v2390_v3 = vsel %vm432_vm8, %v5019_v8, 0.0 }
 0x500   : > { %v2360_v1 = vrot.slane %v5010_v12, 4  ;;  %v2300_v55 = vadd.f32 %v4937_v27, %v2299_v44  ;;  %v5028_v56 = vmax.f32 %v2305_v18, 0.0  ;;  %2538 = vrot.lane.b32.xlu1 %v4985_v60, %s3698_s25  ;;  %v2438_v2 = vsel %vm5670_vm15, %v2429_v23, 0.0  ;;  %v2611_v23 = vld [vmem:[%s5629_s7 + $0x8] sm:$0xff]  ;;  %3589 = vmatpush3.msra.mxu0 %v2612_v14 }
 0x501   : > { %v3563_v28 = vpop.f32.mrf.mxu1  ;;  %v2408_v18 = vrot.slane %v5010_v12, 6  ;;  %v2407_v44 = vrot.slane %v4973_v49, 6  ;;  %3590 = vmatprep.subr.mxu0 %v2611_v23  ;;  %vm5671_vm15 = vcmp.ge.s32.totalorder %v4024_v41, 2  ;;  %3640 = vmatpush3.msra.mxu1 %v2613_v46 }
 0x502   : > { %v5035_v13 = vmax.f32 %v2300_v55, 0.0  ;;  %v2315_v4 = vadd.f32 %v3563_v28, %v4937_v27  ;;  %2472 = vrot.lane.b32.xlu0 %v2430_v5, %s3696_s19  ;;  %v5048_v25 = vsel %vm1855_vm5, %v2359_v10, %v2360_v1  ;;  %v5052_v60 = vsel %vm1855_vm5, %v2360_v1, %v2361_v39  ;;  %3591 = vmatpush3.msra.mxu0 %v2611_v23 }
 0x503   : > { %v2309_v37 = vpop.f32.mrf.mxu1  ;;  %v2363_v61 = vrot.slane %v5028_v56, 4  ;;  %v2427_v58 = vsel %vm689_vm2, %v2407_v44, %v2408_v18  ;;  %3629 = vmatprep.subr.mxu1 %v2612_v14  ;;  %v2392_v43 = vsel %vm434_vm9, %v5048_v25, 0.0 }
 0x504   : > { %v2362_v54 = vrot.slane %v5035_v13, 4  ;;  %v2310_v6 = vadd.f32 %v4937_v27, %v2309_v37  ;;  %v5057_v36 = vmax.f32 %v2315_v4, 0.0  ;;  %2474 = vrot.lane.b32.xlu1 %v2438_v2, %s3696_s19  ;;  %v2410_v37 = vrot.slane %v5035_v13, 6  ;;  %3641 = vmatpush3.msra.mxu1 %v2612_v14 }
 0x505   : > { %v3566_v10 = vpop.f32.mrf.mxu1  ;;  %v2409_v2 = vrot.slane %v5005_v16, 6  ;;  %3630 = vmatprep.subr.mxu1 %v2611_v23 }
 0x506   : > { %v5065_v63 = vmax.f32 %v2310_v6, 0.0  ;;  %v2325_v19 = vadd.f32 %v3566_v10, %v4937_v27  ;;  %2544 = vrot.lane.b32.xlu0 %v5005_v16, %s3698_s25  ;;  %v5074_v55 = vsel %vm1855_vm5, %v2361_v39, %v2362_v54  ;;  %v5078_v28 = vsel %vm1855_vm5, %v2362_v54, %v2363_v61  ;;  %3642 = vmatpush3.msra.mxu1 %v2611_v23 }
 0x507   : > { %v2319_v1 = vpop.f32.mrf.mxu1  ;;  %v2365_v49 = vrot.slane %v5057_v36, 4  ;;  %v2428_v39 = vsel %vm689_vm2, %v2406_v33, %v2407_v44  ;;  %v2610_v33 = vld [vmem:[%s5629_s7] sm:$0xff]  ;;  %v2440_v44 = vsel %vm5671_vm15, %v2427_v58, 0.0  ;;  %vm5672_vm15 = vcmp.ge.s32.totalorder %v4041_v7, 2 }
 0x508   : > { %v2364_v5 = vrot.slane %v5065_v63, 4  ;;  %v2320_v4 = vadd.f32 %v4937_v27, %v2319_v1  ;;  %v5089_v54 = vmax.f32 %v2325_v19, 0.0  ;;  %2542 = vrot.lane.b32.xlu1 %v5010_v12, %s3698_s25  ;;  %3592 = vmatprep.subr.mxu0 %v2610_v33 }
 0x509   : > { %3593 = vmatpush3.msra.mxu0 %v2610_v33  ;;  %3631 = vmatprep.subr.mxu1 %v2610_v33 }
 0x50a   : > { %v5091_v6 = vmax.f32 %v2320_v4, 0.0  ;;  %2476 = vrot.lane.b32.xlu0 %v2428_v39, %s3696_s19  ;;  %v5104_v10 = vsel %vm1855_vm5, %v2364_v5, %v2365_v49  ;;  %v5108_v19 = vsel %vm1855_vm5, %v2363_v61, %v2364_v5  ;;  %v2426_v4 = vsel %vm689_vm2, %v2408_v18, %v2409_v2  ;;  %3643 = vmatpush3.msra.mxu1 %v2610_v33 }
 0x50b   : > { %v2411_v39 = vrot.slane %v5028_v56, 6  ;;  %v2367_v61 = vrot.slane %v5089_v54, 4  ;;  %v2425_v5 = vsel %vm689_vm2, %v2409_v2, %v2410_v37  ;;  %v2396_v7 = vsel %vm438_vm11, %v5108_v19, 0.0 }
 0x50c   : > { %v2366_v12 = vrot.slane %v5091_v6, 4  ;;  %v3569_v1 = vpop.f32.mrf.mxu1  ;;  %2478 = vrot.lane.b32.xlu1 %v2440_v44, %s3696_s19 }
 0x50d   : > { %v2335_v16 = vadd.f32 %v3569_v1, %v4937_v27  ;;  %v2424_v46 = vsel %vm689_vm2, %v2410_v37, %v2411_v39 }
 0x50e   : > { %2480 = vrot.lane.b32.xlu0 %v2426_v4, %s3696_s19  ;;  %v2329_v11 = vpop.f32.mrf.mxu1  ;;  %v5124_v58 = vsel %vm1855_vm5, %v2365_v49, %v2366_v12  ;;  %v5131_v44 = vsel %vm1855_vm5, %v2366_v12, %v2367_v61  ;;  %v2442_v49 = vsel %vm5672_vm15, %v2425_v5, 0.0  ;;  %v5673_v12 = vrot.slane %v4947_v20, 4 }
 0x50f   : > { %v2353_v1 = vmax.f32 %v2335_v16, 0.0  ;;  %v2330_v18 = vadd.f32 %v4937_v27, %v2329_v11  ;;  %v2412_v11 = vrot.slane %v5065_v63, 6  ;;  %v2413_v20 = vrot.slane %v5057_v36, 6 }
 0x510   : > { %2482 = vrot.lane.b32.xlu1 %v2442_v49, %s3696_s19 }
 0x511   : > { %v2369_v4 = vrot.slane %v2353_v1, 4  ;;  %v2417_v47 = vrot.slane %v2353_v1, 6  ;;  %v2352_v2 = vmax.f32 %v2330_v18, 0.0  ;;  %v2423_v23 = vsel %vm689_vm2, %v2411_v39, %v2412_v11 }
 0x512   : > { %2484 = vrot.lane.b32.xlu0 %v2424_v46, %s3696_s19  ;;  %v2444_v33 = vsel %vm422_vm12, %v2423_v23, 0.0  ;;  %v2415_v39 = vrot.slane %v5089_v54, 6  ;;  %vm5675_vm12 = vcmp.ge.s32.totalorder %v4056_v17, 2 }
 0x513   : > { %v2368_v27 = vrot.slane %v2352_v2, 4  ;;  %v2433_v37 = vsel %vm689_vm2, %v2417_v47, %v2402_v22  ;;  %v2385_v14 = vsel %vm1855_vm5, %v2369_v4, %v5673_v12  ;;  %v2422_v22 = vsel %vm689_vm2, %v2412_v11, %v2413_v20 }
 0x514   : > { %v2434_v16 = vsel %vm5674_vm14, %v2433_v37, 0.0 }
 0x515   : > { %v5150_v5 = vsel %vm1855_vm5, %v2368_v27, %v2369_v4  ;;  %v5154_v18 = vsel %vm1855_vm5, %v2367_v61, %v2368_v27  ;;  %2466 = vrot.lane.b32.xlu1 %v2434_v16, %s3696_s19  ;;  %v2414_v61 = vrot.slane %v5091_v6, 6 }
 0x516   : > { %2548 = vrot.lane.b32.xlu0 %v5028_v56, %s3698_s25  ;;  %v2416_v56 = vrot.slane %v2352_v2, 6 }
 0x518   : > { %v2418_v4 = vsel %vm689_vm2, %v2416_v56, %v2417_v47 }
 0x519   : > { %2546 = vrot.lane.b32.xlu1 %v5035_v13, %s3698_s25  ;;  %v2421_v13 = vsel %vm689_vm2, %v2413_v20, %v2414_v61 }
 0x51a   : > { %2488 = vrot.lane.b32.xlu0 %v2422_v22, %s3696_s19  ;;  %v2446_v46 = vsel %vm5675_vm12, %v2421_v13, 0.0 }
 0x51d   : > { %2486 = vrot.lane.b32.xlu1 %v2444_v33, %s3696_s19 }
 0x51e   : > { %2552 = vrot.lane.b32.xlu0 %v5057_v36, %s3698_s25  ;;  %v2419_v36 = vsel %vm689_vm2, %v2415_v39, %v2416_v56 }
 0x521   : > { %2550 = vrot.lane.b32.xlu1 %v5065_v63, %s3698_s25  ;;  %v2420_v63 = vsel %vm689_vm2, %v2414_v61, %v2415_v39  ;;  %v2388_v39 = vsel %vm430_vm6, %v4993_v42, 0.0  ;;  %vm5676_vm2 = vcmp.ge.s32.totalorder %v4056_v17, 4 }
 0x522   : > { %2558 = vrot.lane.b32.xlu0 %v2352_v2, %s3698_s25  ;;  %v2448_v2 = vsel %vm426_vm0, %v2419_v36, 0.0 }
 0x525   : > { %2490 = vrot.lane.b32.xlu1 %v2446_v46, %s3696_s19 }
 0x526   : > { %2496 = vrot.lane.b32.xlu0 %v2418_v4, %s3696_s19  ;;  %v2386_v4 = vsel %vm428_vm7, %v2385_v14, 0.0 }
 0x529   : > { %2492 = vrot.lane.b32.xlu1 %v2420_v63, %s3696_s19 }
 0x52a   : > { %2494 = vrot.lane.b32.xlu0 %v2448_v2, %s3696_s19 }
 0x52d   : > { %2554 = vrot.lane.b32.xlu1 %v5091_v6, %s3698_s25 }
 0x52e   : > { %2560 = vrot.lane.b32.xlu0 %v2353_v1, %s3698_s25 }
 0x531   : > { %2556 = vrot.lane.b32.xlu1 %v5089_v54, %s3698_s25 }
 0x564   : > { %v2533_v47 = vpop.permute.xlu0 %2532 }
 0x566   : > { %v2531_v49 = vpop.permute.xlu1 %2530 }
 0x568   : > { %v2537_v27 = vpop.permute.xlu0 %2536 }
 0x56a   : > { %v2535_v30 = vpop.permute.xlu1 %2534 }
 0x56c   : > { %v2469_v37 = vpop.permute.xlu0 %2468 }
 0x56d   : > { %v2579_v54 = vsel %vm980_vm13, %v4968_v59, %v2469_v37 }
 0x56e   : > { %v2471_v12 = vpop.permute.xlu1 %2470  ;;  %v2595_v15 = vsel %vm1499_vm1, %v2579_v54, %v2533_v47  ;;  %v2398_v54 = vsel %vm5676_vm2, %v5124_v58, 0.0 }
 0x56f   : > { %v2580_v63 = vsel %vm980_vm13, %v2388_v39, %v2471_v12  ;;  %v2394_v12 = vsel %vm436_vm10, %v5074_v55, 0.0 }
 0x570   : > { %v2541_v16 = vpop.permute.xlu0 %2540  ;;  %v2596_v14 = vsel %vm1499_vm1, %v2580_v63, %v2535_v30 }
 0x572   : > { %v2539_v11 = vpop.permute.xlu1 %2538 }
 0x574   : > { %v2473_v20 = vpop.permute.xlu0 %2472 }
 0x575   : > { %v2581_v59 = vsel %vm980_vm13, %v4997_v35, %v2473_v20 }
 0x576   : > { %v2475_v22 = vpop.permute.xlu1 %2474  ;;  %v2597_v47 = vsel %vm1499_vm1, %v2581_v59, %v2537_v27 }
 0x577   : > { %v2582_v37 = vsel %vm980_vm13, %v2390_v3, %v2475_v22 }
 0x578   : > { %v2545_v23 = vpop.permute.xlu0 %2544  ;;  %v2598_v8 = vsel %vm1499_vm1, %v2582_v37, %v2539_v11 }
 0x57a   : > { %v2543_v33 = vpop.permute.xlu1 %2542 }
 0x57c   : > { %v2477_v61 = vpop.permute.xlu0 %2476 }
 0x57e   : > { %v2479_v56 = vpop.permute.xlu1 %2478 }
 0x580   : > { %v2481_v6 = vpop.permute.xlu0 %2480 }
 0x581   : > { %v2585_v27 = vsel %vm980_vm13, %v5052_v60, %v2481_v6 }
 0x582   : > { %v2483_v13 = vpop.permute.xlu1 %2482  ;;  %v2601_v20 = vsel %vm1499_vm1, %v2585_v27, %v2545_v23 }
 0x583   : > { %v2586_v11 = vsel %vm980_vm13, %v2394_v12, %v2483_v13  ;;  %v2400_v13 = vsel %vm442_vm3, %v5154_v18, 0.0 }
 0x584   : > { %v2485_v1 = vpop.permute.xlu0 %2484 }
 0x587   : > { %v2467_v46 = vpop.permute.xlu1 %2466 }
 0x588   : > { %v2549_v36 = vpop.permute.xlu0 %2548  ;;  %v2578_v2 = vsel %vm980_vm13, %v2386_v4, %v2467_v46 }
 0x589   : > { %v2594_v26 = vsel %vm1499_vm1, %v2578_v2, %v2531_v49  ;;  %v2584_v49 = vsel %vm980_vm13, %v2392_v43, %v2479_v56 }
 0x58a   : > { %3594 = vmatprep.mubr.msk.f32.mxu0 %vm1533_vm4, %v2594_v26  ;;  %v2583_v26 = vsel %vm980_vm13, %v5023_v57, %v2477_v61  ;;  %v2600_v41 = vsel %vm1499_vm1, %v2584_v49, %v2543_v33  ;;  %v2587_v33 = vsel %vm980_vm13, %v5078_v28, %v2485_v1 }
 0x58b   : > { %v2547_v48 = vpop.permute.xlu1 %2546  ;;  %3595 = vmatmul.mubr.msk.f32.vlgmr.msra.gmra.mxu0 %vm1533_vm4, %v2595_v15  ;;  %v2599_v30 = vsel %vm1499_vm1, %v2583_v26, %v2541_v16  ;;  %v2603_v55 = vsel %vm1499_vm1, %v2587_v33, %v2549_v36 }
 0x58c   : > { %v2489_v42 = vpop.permute.xlu0 %2488  ;;  %3597 = vmatprep.mubr.msk.f32.mxu0 %vm1533_vm4, %v2596_v14  ;;  %v2602_v16 = vsel %vm1499_vm1, %v2586_v11, %v2547_v48 }
 0x58d   : > { %v2589_v24 = vsel %vm980_vm13, %v5104_v10, %v2489_v42 }
 0x58f   : > { %v2487_v35 = vpop.permute.xlu1 %2486  ;;  %3598 = vmatmul.mubr.msk.f32.gmra.mxu0 %vm1533_vm4, %v2597_v47 }
 0x590   : > { %v2553_v15 = vpop.permute.xlu0 %2552  ;;  %3600 = vmatprep.mubr.msk.f32.mxu0 %vm1533_vm4, %v2598_v8  ;;  %v2588_v61 = vsel %vm980_vm13, %v2396_v7, %v2487_v35 }
 0x591   : > { %v2605_v1 = vsel %vm1499_vm1, %v2589_v24, %v2553_v15 }
 0x593   : > { %v2551_v57 = vpop.permute.xlu1 %2550  ;;  %3601 = vmatmul.mubr.msk.f32.gmra.mxu0 %vm1533_vm4, %v2599_v30 }
 0x594   : > { %v2559_v25 = vpop.permute.xlu0 %2558  ;;  %3603 = vmatprep.mubr.msk.f32.mxu0 %vm1533_vm4, %v2600_v41  ;;  %v2604_v23 = vsel %vm1499_vm1, %v2588_v61, %v2551_v57 }
 0x597   : > { %v2491_v22 = vpop.permute.xlu1 %2490  ;;  %3604 = vmatmul.mubr.msk.f32.gmra.mxu0 %vm1533_vm4, %v2601_v20 }
 0x598   : > { %v2497_v60 = vpop.permute.xlu0 %2496  ;;  %3606 = vmatprep.mubr.msk.f32.mxu0 %vm1533_vm4, %v2602_v16  ;;  %v2590_v40 = vsel %vm980_vm13, %v2398_v54, %v2491_v22 }
 0x599   : > { %v2593_v18 = vsel %vm980_vm13, %v5150_v5, %v2497_v60  ;;  %v5280_v5 = vld [vmem:[%s5630_s8 + $0x1] ss:$0 sm:$0xff] }
 0x59b   : > { %v2493_v56 = vpop.permute.xlu1 %2492  ;;  %3607 = vmatmul.mubr.msk.f32.gmra.mxu0 %vm1533_vm4, %v2603_v55 }
 0x59c   : > { %v2495_v6 = vpop.permute.xlu0 %2494  ;;  %3609 = vmatprep.mubr.msk.f32.mxu0 %vm1533_vm4, %v2604_v23  ;;  %v2591_v17 = vsel %vm980_vm13, %v5131_v44, %v2493_v56 }
 0x59d   : > { %v2592_v28 = vsel %vm980_vm13, %v2400_v13, %v2495_v6 }
 0x59e   : > { %v2608_v19 = vsel %vm1499_vm1, %v2592_v28, %v2559_v25 }
 0x59f   : > { %3615 = vmatprep.mubr.msk.f32.mxu1 %vm1533_vm4, %v2608_v19  ;;  %v2555_v39 = vpop.permute.xlu1 %2554  ;;  %3610 = vmatmul.mubr.msk.f32.gmra.mxu0 %vm1533_vm4, %v2605_v1 }
 0x5a0   : > { %v2561_v46 = vpop.permute.xlu0 %2560  ;;  %v2606_v10 = vsel %vm1499_vm1, %v2590_v40, %v2555_v39 }
 0x5a1   : > { %v2609_v4 = vsel %vm1499_vm1, %v2593_v18, %v2561_v46  ;;  %3612 = vmatprep.mubr.msk.f32.mxu0 %vm1533_vm4, %v2606_v10 }
 0x5a2   : > { %3616 = vmatmul.mubr.msk.f32.vlgmr.msra.gmra.mxu1 %vm1533_vm4, %v2609_v4 }
 0x5a3   : > { %v2557_v58 = vpop.permute.xlu1 %2556 }
 0x5a4   : > { %v2607_v36 = vsel %vm1499_vm1, %v2591_v17, %v2557_v58 }
 0x5a5   : > { %3613 = vmatmul.mubr.msk.f32.gmra.mxu0 %vm1533_vm4, %v2607_v36 }
 0x64b   : > { %v3596_v63 = vpop.f32.mrf.mxu0 }
 0x64c   : > { %v2747_v2 = vadd.f32 %v3596_v63, %v5280_v5 }
 0x64d   : > { %v2741_v59 = vpop.f32.mrf.mxu0 }
 0x64e   : > { %v2821_v3 = vmax.f32 %v2747_v2, 0.0  ;;  %v2742_v48 = vadd.f32 %v5280_v5, %v2741_v59 }
 0x64f   : > { %v3599_v42 = vpop.f32.mrf.mxu0 }
 0x650   : > { %v5285_v44 = vadd.f32 %v2821_v3, %v4605_v9  ;;  %v2820_v14 = vmax.f32 %v2742_v48, 0.0  ;;  %v2757_v37 = vadd.f32 %v3599_v42, %v5280_v5 }
 0x651   : > { %v2751_v47 = vpop.f32.mrf.mxu0 }
 0x652   : > { %v2853_v26 = vmax.f32 %v5285_v44, 0.0  ;;  %v5290_v43 = vadd.f32 %v2820_v14, %v4611_v51  ;;  %v2823_v35 = vmax.f32 %v2757_v37, 0.0  ;;  %v2752_v15 = vadd.f32 %v5280_v5, %v2751_v47 }
 0x653   : > { %v3602_v8 = vpop.f32.mrf.mxu0 }
 0x654   : > { %v2852_v49 = vmax.f32 %v5290_v43, 0.0  ;;  %v5295_v30 = vadd.f32 %v2823_v35, %v4616_v0  ;;  %v2822_v9 = vmax.f32 %v2752_v15, 0.0  ;;  %v2767_v27 = vadd.f32 %v3602_v8, %v5280_v5 }
 0x655   : > { %v2761_v57 = vpop.f32.mrf.mxu0  ;;  %v2871_v41 = vsel %vm980_vm13, %v2853_v26, 0.0 }
 0x656   : > { %v5302_v51 = vadd.f32 %v2822_v9, %v4628_v62  ;;  %v2825_v25 = vmax.f32 %v2767_v27, 0.0  ;;  %v2762_v12 = vadd.f32 %v5280_v5, %v2761_v57  ;;  %2872 = vadd.xlane.f32.xlu0 %v2871_v41  ;;  %v2855_v11 = vmax.f32 %v5295_v30, 0.0 }
 0x657   : > { %v3605_v20 = vpop.f32.mrf.mxu0  ;;  %v2868_v0 = vsel %vm980_vm13, %v2852_v49, 0.0 }
 0x658   : > { %v2854_v16 = vmax.f32 %v5302_v51, 0.0  ;;  %v5311_v22 = vadd.f32 %v2825_v25, %v4650_v53  ;;  %v2824_v60 = vmax.f32 %v2762_v12, 0.0  ;;  %v2777_v62 = vadd.f32 %v3605_v20, %v5280_v5  ;;  %2869 = vadd.xlane.f32.xlu1 %v2868_v0 }
 0x659   : > { %v2771_v33 = vpop.f32.mrf.mxu0  ;;  %v2877_v6 = vsel %vm980_vm13, %v2855_v11, 0.0 }
 0x65a   : > { %v5315_v7 = vadd.f32 %v2824_v60, %v4645_v34  ;;  %v2827_v55 = vmax.f32 %v2777_v62, 0.0  ;;  %v2772_v61 = vadd.f32 %v5280_v5, %v2771_v33  ;;  %v2857_v23 = vmax.f32 %v5311_v22, 0.0 }
 0x65b   : > { %v3608_v56 = vpop.f32.mrf.mxu0  ;;  %v2874_v53 = vsel %vm980_vm13, %v2854_v16, 0.0 }
 0x65c   : > { %v2856_v13 = vmax.f32 %v5315_v7, 0.0  ;;  %v5327_v28 = vadd.f32 %v2827_v55, %v4682_v45  ;;  %v2826_v34 = vmax.f32 %v2772_v61, 0.0  ;;  %v2787_v24 = vadd.f32 %v3608_v56, %v5280_v5  ;;  %2878 = vadd.xlane.f32.xlu1 %v2877_v6  ;;  %2875 = vadd.xlane.f32.xlu0 %v2874_v53  ;;  %v5677_v56 = vld [vmem:[#allocation3_spill] sm:$0xff]  ;;  %v5678_v53 = vld [vmem:[#allocation4_spill] sm:$0xff] }
 0x65d   : > { %v2781_v19 = vpop.f32.mrf.mxu0  ;;  %v2883_v45 = vsel %vm980_vm13, %v2857_v23, 0.0 }
 0x65e   : > { %v5331_v1 = vadd.f32 %v2826_v34, %v4672_v21  ;;  %v2829_v54 = vmax.f32 %v2787_v24, 0.0  ;;  %v2782_v40 = vadd.f32 %v5280_v5, %v2781_v19  ;;  %v2859_v18 = vmax.f32 %v5327_v28, 0.0 }
 0x65f   : > { %v3611_v39 = vpop.f32.mrf.mxu0  ;;  %v2880_v46 = vsel %vm980_vm13, %v2856_v13, 0.0 }
 0x660   : > { %v2858_v10 = vmax.f32 %v5331_v1, 0.0  ;;  %v5343_v4 = vadd.f32 %v2829_v54, %v4710_v32  ;;  %v2828_v21 = vmax.f32 %v2782_v40, 0.0  ;;  %v2797_v17 = vadd.f32 %v3611_v39, %v5280_v5  ;;  %2884 = vadd.xlane.f32.xlu1 %v2883_v45  ;;  %2881 = vadd.xlane.f32.xlu0 %v2880_v46 }
 0x661   : > { %v2791_v58 = vpop.f32.mrf.mxu0  ;;  %v2889_v32 = vsel %vm980_vm13, %v2859_v18, 0.0 }
 0x662   : > { %v3617_v36 = vpop.f32.mrf.mxu1  ;;  %v5347_v63 = vadd.f32 %v2828_v21, %v4696_v50  ;;  %v2831_v2 = vmax.f32 %v2797_v17, 0.0  ;;  %v2792_v59 = vadd.f32 %v5280_v5, %v2791_v58  ;;  %v2861_v3 = vmax.f32 %v5343_v4, 0.0 }
 0x663   : > { %v2817_v48 = vadd.f32 %v3617_v36, %v5280_v5  ;;  %v2886_v42 = vsel %vm980_vm13, %v2858_v10, 0.0 }
 0x664   : > { %v2811_v14 = vpop.f32.mrf.mxu1  ;;  %v2860_v37 = vmax.f32 %v5347_v63, 0.0  ;;  %v5360_v50 = vadd.f32 %v2831_v2, %v4731_v52  ;;  %v2830_v47 = vmax.f32 %v2792_v59, 0.0  ;;  %2890 = vadd.xlane.f32.xlu1 %v2889_v32  ;;  %2887 = vadd.xlane.f32.xlu0 %v2886_v42  ;;  %v2895_v52 = vsel %vm980_vm13, %v2861_v3, 0.0 }
 0x665   : > { %v2812_v35 = vadd.f32 %v5280_v5, %v2811_v14  ;;  %v3614_v15 = vpop.f32.mrf.mxu0  ;;  %v2835_v57 = vmax.f32 %v2817_v48, 0.0 }
 0x666   : > { %v5364_v8 = vadd.f32 %v2830_v47, %v4725_v29  ;;  %v2807_v9 = vadd.f32 %v3614_v15, %v5280_v5  ;;  %v2863_v27 = vmax.f32 %v5360_v50, 0.0  ;;  %v2892_v25 = vsel %vm980_vm13, %v2860_v37, 0.0 }
 0x667   : > { %v2801_v41 = vpop.f32.mrf.mxu0  ;;  %v2834_v20 = vmax.f32 %v2812_v35, 0.0  ;;  %v5383_v55 = vadd.f32 %v2835_v57, %v4722_v31 }
 0x668   : > { %v2862_v12 = vmax.f32 %v5364_v8, 0.0  ;;  %v2833_v0 = vmax.f32 %v2807_v9, 0.0  ;;  %v2802_v29 = vadd.f32 %v5280_v5, %v2801_v41  ;;  %2896 = vadd.xlane.f32.xlu1 %v2895_v52  ;;  %2893 = vadd.xlane.f32.xlu0 %v2892_v25  ;;  %v2901_v61 = vsel %vm980_vm13, %v2863_v27, 0.0 }
 0x669   : > { %v5389_v6 = vadd.f32 %v2834_v20, %v5677_v56  ;;  %v2867_v24 = vmax.f32 %v5383_v55, 0.0 }
 0x66a   : > { %v5377_v60 = vadd.f32 %v2833_v0, %v4755_v38  ;;  %v2832_v62 = vmax.f32 %v2802_v29, 0.0  ;;  %v2898_v33 = vsel %vm980_vm13, %v2862_v12, 0.0 }
 0x66b   : > { %v2866_v19 = vmax.f32 %v5389_v6, 0.0  ;;  %v2913_v40 = vsel %vm980_vm13, %v2867_v24, 0.0 }
 0x66c   : > { %v2865_v5 = vmax.f32 %v5377_v60, 0.0  ;;  %v5393_v38 = vadd.f32 %v2832_v62, %v5678_v53  ;;  %2902 = vadd.xlane.f32.xlu1 %v2901_v61  ;;  %2899 = vadd.xlane.f32.xlu0 %v2898_v33 }
 0x66d   : > { %v2910_v39 = vsel %vm980_vm13, %v2866_v19, 0.0 }
 0x66e   : > { %v2864_v34 = vmax.f32 %v5393_v38, 0.0  ;;  %v2907_v31 = vsel %vm980_vm13, %v2865_v5, 0.0 }
 0x670   : > { %2908 = vadd.xlane.f32.xlu1 %v2907_v31  ;;  %v2904_v54 = vsel %vm980_vm13, %v2864_v34, 0.0 }
 0x671   : > { %2905 = vadd.xlane.f32.xlu0 %v2904_v54 }
 0x674   : > { %2914 = vadd.xlane.f32.xlu1 %v2913_v40 }
 0x675   : > { %2911 = vadd.xlane.f32.xlu0 %v2910_v39 }
 0x6df   : > { %v2873_v45 = vpop.xlane.xlu0 %2872 }
 0x6e0   : > { %v2918_v46 = vmul.f32 0.03125, %v2873_v45 }
 0x6e1   : > { %v2870_v21 = vpop.xlane.xlu1 %2869 }
 0x6e2   : > { %v5412_v17 = vsub.f32 %v2853_v26, %v2918_v46  ;;  %v2917_v58 = vmul.f32 0.03125, %v2870_v21 }
 0x6e4   : > { %v5416_v36 = vsub.f32 %v2852_v49, %v2917_v58  ;;  %v2950_v2 = vmul.f32 %v5412_v17, %v5412_v17 }
 0x6e5   : > { %v2879_v59 = vpop.xlane.xlu1 %2878  ;;  %v2876_v48 = vpop.xlane.xlu0 %2875 }
 0x6e6   : > { %v2920_v32 = vmul.f32 0.03125, %v2879_v59  ;;  %v2919_v42 = vmul.f32 0.03125, %v2876_v48  ;;  %v2968_v14 = vsel %vm980_vm13, %v2950_v2, 0.0  ;;  %v2949_v47 = vmul.f32 %v5416_v36, %v5416_v36 }
 0x6e7   : > { %2969 = vadd.xlane.f32.xlu1 %v2968_v14 }
 0x6e8   : > { %v5425_v44 = vsub.f32 %v2855_v11, %v2920_v32  ;;  %v5429_v26 = vsub.f32 %v2854_v16, %v2919_v42  ;;  %v2965_v43 = vsel %vm980_vm13, %v2949_v47, 0.0 }
 0x6e9   : > { %v2885_v49 = vpop.xlane.xlu1 %2884  ;;  %v2882_v35 = vpop.xlane.xlu0 %2881  ;;  %2966 = vadd.xlane.f32.xlu0 %v2965_v43 }
 0x6ea   : > { %v2922_v15 = vmul.f32 0.03125, %v2885_v49  ;;  %v2921_v9 = vmul.f32 0.03125, %v2882_v35  ;;  %v2952_v57 = vmul.f32 %v5425_v44, %v5425_v44  ;;  %v2951_v41 = vmul.f32 %v5429_v26, %v5429_v26 }
 0x6ec   : > { %v5438_v30 = vsub.f32 %v2857_v23, %v2922_v15  ;;  %v5442_v51 = vsub.f32 %v2856_v13, %v2921_v9  ;;  %v2974_v11 = vsel %vm980_vm13, %v2952_v57, 0.0  ;;  %v2971_v16 = vsel %vm980_vm13, %v2951_v41, 0.0 }
 0x6ed   : > { %v2891_v52 = vpop.xlane.xlu1 %2890  ;;  %v2888_v25 = vpop.xlane.xlu0 %2887  ;;  %2975 = vadd.xlane.f32.xlu1 %v2974_v11  ;;  %2972 = vadd.xlane.f32.xlu0 %v2971_v16 }
 0x6ee   : > { %v2924_v20 = vmul.f32 0.03125, %v2891_v52  ;;  %v2923_v0 = vmul.f32 0.03125, %v2888_v25  ;;  %v2954_v29 = vmul.f32 %v5438_v30, %v5438_v30  ;;  %v2953_v22 = vmul.f32 %v5442_v51, %v5442_v51 }
 0x6f0   : > { %v5452_v7 = vsub.f32 %v2859_v18, %v2924_v20  ;;  %v5456_v23 = vsub.f32 %v2858_v10, %v2923_v0  ;;  %v2980_v13 = vsel %vm980_vm13, %v2954_v29, 0.0  ;;  %v2977_v62 = vsel %vm980_vm13, %v2953_v22, 0.0 }
 0x6f1   : > { %v2897_v33 = vpop.xlane.xlu1 %2896  ;;  %v2894_v61 = vpop.xlane.xlu0 %2893  ;;  %2981 = vadd.xlane.f32.xlu1 %v2980_v13  ;;  %2978 = vadd.xlane.f32.xlu0 %v2977_v62 }
 0x6f2   : > { %v2926_v56 = vmul.f32 0.03125, %v2897_v33  ;;  %v2925_v53 = vmul.f32 0.03125, %v2894_v61  ;;  %v2956_v31 = vmul.f32 %v5452_v7, %v5452_v7  ;;  %v2955_v28 = vmul.f32 %v5456_v23, %v5456_v23 }
 0x6f4   : > { %v5466_v1 = vsub.f32 %v2861_v3, %v2926_v56  ;;  %v5470_v18 = vsub.f32 %v2860_v37, %v2925_v53  ;;  %v2986_v10 = vsel %vm980_vm13, %v2956_v31, 0.0  ;;  %v2983_v54 = vsel %vm980_vm13, %v2955_v28, 0.0 }
 0x6f5   : > { %v2903_v40 = vpop.xlane.xlu1 %2902  ;;  %v2900_v39 = vpop.xlane.xlu0 %2899  ;;  %2987 = vadd.xlane.f32.xlu1 %v2986_v10  ;;  %2984 = vadd.xlane.f32.xlu0 %v2983_v54 }
 0x6f6   : > { %v2928_v45 = vmul.f32 0.03125, %v2903_v40  ;;  %v2927_v46 = vmul.f32 0.03125, %v2900_v39  ;;  %v2958_v21 = vmul.f32 %v5466_v1, %v5466_v1  ;;  %v2957_v4 = vmul.f32 %v5470_v18, %v5470_v18 }
 0x6f8   : > { %v5480_v63 = vsub.f32 %v2863_v27, %v2928_v45  ;;  %v5484_v3 = vsub.f32 %v2862_v12, %v2927_v46  ;;  %v2992_v37 = vsel %vm980_vm13, %v2958_v21, 0.0  ;;  %v2989_v58 = vsel %vm980_vm13, %v2957_v4, 0.0  ;;  %v5525_v4 = vld [vmem:[%s5631_s9] ss:$0 sm:$0xff] }
 0x6f9   : > { %v2909_v2 = vpop.xlane.xlu1 %2908  ;;  %2993 = vadd.xlane.f32.xlu1 %v2992_v37  ;;  %2990 = vadd.xlane.f32.xlu0 %v2989_v58 }
 0x6fa   : > { %v2930_v59 = vmul.f32 0.03125, %v2909_v2  ;;  %v2906_v48 = vpop.xlane.xlu0 %2905  ;;  %v2960_v32 = vmul.f32 %v5480_v63, %v5480_v63  ;;  %v2959_v50 = vmul.f32 %v5484_v3, %v5484_v3 }
 0x6fb   : > { %v2929_v27 = vmul.f32 0.03125, %v2906_v48 }
 0x6fc   : > { %v5494_v8 = vsub.f32 %v2865_v5, %v2930_v59  ;;  %v2998_v12 = vsel %vm980_vm13, %v2960_v32, 0.0  ;;  %v2995_v42 = vsel %vm980_vm13, %v2959_v50, 0.0  ;;  %v5531_v50 = vld [vmem:[%s5631_s9 + $0x1] ss:$0 sm:$0xff] }
 0x6fd   : > { %v5500_v14 = vsub.f32 %v2864_v34, %v2929_v27  ;;  %2999 = vadd.xlane.f32.xlu1 %v2998_v12  ;;  %v2915_v47 = vpop.xlane.xlu1 %2914  ;;  %2996 = vadd.xlane.f32.xlu0 %v2995_v42 }
 0x6fe   : > { %v2932_v43 = vmul.f32 0.03125, %v2915_v47  ;;  %v2912_v49 = vpop.xlane.xlu0 %2911  ;;  %v2962_v35 = vmul.f32 %v5494_v8, %v5494_v8 }
 0x6ff   : > { %v2931_v15 = vmul.f32 0.03125, %v2912_v49  ;;  %v2961_v60 = vmul.f32 %v5500_v14, %v5500_v14 }
 0x700   : > { %v5508_v5 = vsub.f32 %v2867_v24, %v2932_v43  ;;  %v3004_v38 = vsel %vm980_vm13, %v2962_v35, 0.0 }
 0x701   : > { %v5513_v34 = vsub.f32 %v2866_v19, %v2931_v15  ;;  %3005 = vadd.xlane.f32.xlu1 %v3004_v38  ;;  %v3001_v9 = vsel %vm980_vm13, %v2961_v60, 0.0 }
 0x702   : > { %3002 = vadd.xlane.f32.xlu0 %v3001_v9  ;;  %v2964_v57 = vmul.f32 %v5508_v5, %v5508_v5 }
 0x703   : > { %v2963_v41 = vmul.f32 %v5513_v34, %v5513_v34 }
 0x704   : > { %v3010_v55 = vsel %vm980_vm13, %v2964_v57, 0.0 }
 0x705   : > { %3011 = vadd.xlane.f32.xlu1 %v3010_v55  ;;  %v3007_v24 = vsel %vm980_vm13, %v2963_v41, 0.0 }
 0x706   : > { %3008 = vadd.xlane.f32.xlu0 %v3007_v24 }
 0x770   : > { %v2970_v11 = vpop.xlane.xlu1 %2969 }
 0x771   : > { %v3014_v6 = vmul.f32 0.03125, %v2970_v11 }
 0x772   : > { %v2967_v19 = vpop.xlane.xlu0 %2966 }
 0x773   : > { %v3030_v16 = vadd.f32 1e-05, %v3014_v6  ;;  %v3013_v52 = vmul.f32 0.03125, %v2967_v19 }
 0x775   : > { %3656 = vrsqrt.f32 %v3030_v16  ;;  %v3029_v25 = vadd.f32 1e-05, %v3013_v52 }
 0x776   : > { %v2976_v20 = vpop.xlane.xlu1 %2975  ;;  %v2973_v0 = vpop.xlane.xlu0 %2972 }
 0x777   : > { %3658 = vrsqrt.f32 %v3029_v25  ;;  %v3016_v29 = vmul.f32 0.03125, %v2976_v20  ;;  %v3015_v22 = vmul.f32 0.03125, %v2973_v0 }
 0x779   : > { %v3032_v13 = vadd.f32 1e-05, %v3016_v29  ;;  %v3031_v62 = vadd.f32 1e-05, %v3015_v22 }
 0x77a   : > { %v2982_v33 = vpop.xlane.xlu1 %2981  ;;  %v2979_v61 = vpop.xlane.xlu0 %2978 }
 0x77b   : > { %3660 = vrsqrt.f32 %v3032_v13  ;;  %v3018_v56 = vmul.f32 0.03125, %v2982_v33  ;;  %v3017_v53 = vmul.f32 0.03125, %v2979_v61 }
 0x77c   : > { %3662 = vrsqrt.f32 %v3031_v62 }
 0x77d   : > { %v3034_v31 = vadd.f32 1e-05, %v3018_v56  ;;  %v3033_v28 = vadd.f32 1e-05, %v3017_v53 }
 0x77e   : > { %v2988_v10 = vpop.xlane.xlu1 %2987  ;;  %v2985_v54 = vpop.xlane.xlu0 %2984 }
 0x77f   : > { %3664 = vrsqrt.f32 %v3034_v31  ;;  %v3020_v40 = vmul.f32 0.03125, %v2988_v10  ;;  %v3019_v39 = vmul.f32 0.03125, %v2985_v54 }
 0x780   : > { %3666 = vrsqrt.f32 %v3033_v28 }
 0x781   : > { %v3036_v45 = vadd.f32 1e-05, %v3020_v40  ;;  %v3035_v46 = vadd.f32 1e-05, %v3019_v39 }
 0x782   : > { %v3657_v21 = vpop.eup %3656  ;;  %v2994_v37 = vpop.xlane.xlu1 %2993 }
 0x783   : > { %v2991_v58 = vpop.xlane.xlu0 %2990  ;;  %v3062_v2 = vmul.f32 %v3657_v21, %v5412_v17  ;;  %3668 = vrsqrt.f32 %v3036_v45  ;;  %v3022_v59 = vmul.f32 0.03125, %v2994_v37 }
 0x784   : > { %v3021_v48 = vmul.f32 0.03125, %v2991_v58  ;;  %v3659_v32 = vpop.eup %3658  ;;  %3670 = vrsqrt.f32 %v3035_v46 }
 0x785   : > { %v3083_v27 = vmul.f32 %v5525_v4, %v3062_v2  ;;  %v3061_v12 = vmul.f32 %v3659_v32, %v5416_v36  ;;  %v3038_v42 = vadd.f32 1e-05, %v3022_v59 }
 0x786   : > { %v3037_v47 = vadd.f32 1e-05, %v3021_v48  ;;  %v3000_v17 = vpop.xlane.xlu1 %2999 }
 0x787   : > { %v2997_v43 = vpop.xlane.xlu0 %2996  ;;  %v3104_v49 = vadd.f32 %v5531_v50, %v3083_v27  ;;  %v3082_v35 = vmul.f32 %v5525_v4, %v3061_v12  ;;  %3672 = vrsqrt.f32 %v3038_v42  ;;  %v3024_v15 = vmul.f32 0.03125, %v3000_v17 }
 0x788   : > { %v3661_v60 = vpop.eup %3660  ;;  %3674 = vrsqrt.f32 %v3037_v47  ;;  %v3023_v36 = vmul.f32 0.03125, %v2997_v43 }
 0x789   : > { %v3663_v38 = vpop.eup %3662  ;;  %3120 = vst.msk [vmem:[%s5540_s20 + $0x8] sm:$0xff] %vm980_vm13, %v3104_v49  ;;  %v3103_v9 = vadd.f32 %v5531_v50, %v3082_v35  ;;  %v3064_v57 = vmul.f32 %v3661_v60, %v5425_v44  ;;  %v3040_v41 = vadd.f32 1e-05, %v3024_v15 }
 0x78a   : > { %v3063_v55 = vmul.f32 %v3663_v38, %v5429_v26  ;;  %v3039_v24 = vadd.f32 1e-05, %v3023_v36  ;;  %v3006_v11 = vpop.xlane.xlu1 %3005 }
 0x78b   : > { %3119 = vst.msk [vmem:[%s5540_s20] sm:$0xff] %vm980_vm13, %v3103_v9  ;;  %v3085_v6 = vmul.f32 %v5525_v4, %v3064_v57  ;;  %3676 = vrsqrt.f32 %v3040_v41  ;;  %v3026_v19 = vmul.f32 0.03125, %v3006_v11  ;;  %v3003_v16 = vpop.xlane.xlu0 %3002 }
 0x78c   : > { %v3665_v52 = vpop.eup %3664  ;;  %v3084_v25 = vmul.f32 %v5525_v4, %v3063_v55  ;;  %3678 = vrsqrt.f32 %v3039_v24  ;;  %v3025_v20 = vmul.f32 0.03125, %v3003_v16 }
 0x78d   : > { %v3667_v44 = vpop.eup %3666  ;;  %v3106_v0 = vadd.f32 %v5531_v50, %v3085_v6  ;;  %v3066_v26 = vmul.f32 %v3665_v52, %v5438_v30  ;;  %v3042_v29 = vadd.f32 1e-05, %v3026_v19 }
 0x78e   : > { %v3105_v22 = vadd.f32 %v5531_v50, %v3084_v25  ;;  %v3065_v13 = vmul.f32 %v3667_v44, %v5442_v51  ;;  %v3041_v62 = vadd.f32 1e-05, %v3025_v20  ;;  %v3012_v33 = vpop.xlane.xlu1 %3011 }
 0x78f   : > { %3122 = vst.msk [vmem:[%s5540_s20 + $0x18] sm:$0xff] %vm980_vm13, %v3106_v0  ;;  %v3087_v61 = vmul.f32 %v5525_v4, %v3066_v26  ;;  %3680 = vrsqrt.f32 %v3042_v29  ;;  %v3028_v56 = vmul.f32 0.03125, %v3012_v33  ;;  %v3009_v53 = vpop.xlane.xlu0 %3008 }
 0x790   : > { %v3669_v31 = vpop.eup %3668  ;;  %3121 = vst.msk [vmem:[%s5540_s20 + $0x10] sm:$0xff] %vm980_vm13, %v3105_v22  ;;  %v3086_v30 = vmul.f32 %v5525_v4, %v3065_v13  ;;  %3682 = vrsqrt.f32 %v3041_v62  ;;  %v3027_v28 = vmul.f32 0.03125, %v3009_v53 }
 0x791   : > { %v3671_v10 = vpop.eup %3670  ;;  %v3108_v51 = vadd.f32 %v5531_v50, %v3087_v61  ;;  %v3068_v54 = vmul.f32 %v3669_v31, %v5452_v7  ;;  %v3044_v40 = vadd.f32 1e-05, %v3028_v56 }
 0x792   : > { %v3107_v39 = vadd.f32 %v5531_v50, %v3086_v30  ;;  %v3067_v45 = vmul.f32 %v3671_v10, %v5456_v23  ;;  %v3043_v46 = vadd.f32 1e-05, %v3027_v28 }
 0x793   : > { %3124 = vst.msk [vmem:[%s5540_s20 + $0x28] sm:$0xff] %vm980_vm13, %v3108_v51  ;;  %v3089_v21 = vmul.f32 %v5525_v4, %v3068_v54  ;;  %3684 = vrsqrt.f32 %v3044_v40 }
 0x794   : > { %v3673_v37 = vpop.eup %3672  ;;  %3123 = vst.msk [vmem:[%s5540_s20 + $0x20] sm:$0xff] %vm980_vm13, %v3107_v39  ;;  %v3088_v58 = vmul.f32 %v5525_v4, %v3067_v45  ;;  %3686 = vrsqrt.f32 %v3043_v46 }
 0x795   : > { %v3675_v7 = vpop.eup %3674  ;;  %v3110_v2 = vadd.f32 %v5531_v50, %v3089_v21  ;;  %v3070_v59 = vmul.f32 %v3673_v37, %v5466_v1 }
 0x796   : > { %v3109_v23 = vadd.f32 %v5531_v50, %v3088_v58  ;;  %v3069_v48 = vmul.f32 %v3675_v7, %v5470_v18 }
 0x797   : > { %3126 = vst.msk [vmem:[%s5540_s20 + $0x38] sm:$0xff] %vm980_vm13, %v3110_v2  ;;  %v3091_v32 = vmul.f32 %v5525_v4, %v3070_v59 }
 0x798   : > { %v3677_v27 = vpop.eup %3676  ;;  %3125 = vst.msk [vmem:[%s5540_s20 + $0x30] sm:$0xff] %vm980_vm13, %v3109_v23  ;;  %v3090_v12 = vmul.f32 %v5525_v4, %v3069_v48 }
 0x799   : > { %v3679_v42 = vpop.eup %3678  ;;  %v3112_v47 = vadd.f32 %v5531_v50, %v3091_v32  ;;  %v3072_v1 = vmul.f32 %v3677_v27, %v5480_v63 }
 0x79a   : > { %v3111_v17 = vadd.f32 %v5531_v50, %v3090_v12  ;;  %v3071_v18 = vmul.f32 %v3679_v42, %v5484_v3 }
 0x79b   : > { %3128 = vst.msk [vmem:[%s5540_s20 + $0x48] sm:$0xff] %vm980_vm13, %v3112_v47  ;;  %v3093_v43 = vmul.f32 %v5525_v4, %v3072_v1 }
 0x79c   : > { %v3681_v49 = vpop.eup %3680  ;;  %3127 = vst.msk [vmem:[%s5540_s20 + $0x40] sm:$0xff] %vm980_vm13, %v3111_v17  ;;  %v3092_v35 = vmul.f32 %v5525_v4, %v3071_v18 }
 0x79d   : > { %v3683_v15 = vpop.eup %3682  ;;  %v3114_v60 = vadd.f32 %v5531_v50, %v3093_v43  ;;  %v3074_v63 = vmul.f32 %v3681_v49, %v5494_v8 }
 0x79e   : > { %v3113_v36 = vadd.f32 %v5531_v50, %v3092_v35  ;;  %v3073_v3 = vmul.f32 %v3683_v15, %v5500_v14 }
 0x79f   : > { %3130 = vst.msk [vmem:[%s5540_s20 + $0x58] sm:$0xff] %vm980_vm13, %v3114_v60  ;;  %v3095_v38 = vmul.f32 %v5525_v4, %v3074_v63 }
 0x7a0   : > { %v3685_v9 = vpop.eup %3684  ;;  %3129 = vst.msk [vmem:[%s5540_s20 + $0x50] sm:$0xff] %vm980_vm13, %v3113_v36  ;;  %v3094_v57 = vmul.f32 %v5525_v4, %v3073_v3 }
 0x7a1   : > { %v3687_v41 = vpop.eup %3686  ;;  %v3116_v55 = vadd.f32 %v5531_v50, %v3095_v38  ;;  %v3076_v8 = vmul.f32 %v3685_v9, %v5508_v5 }
 0x7a2   : > { %v3115_v24 = vadd.f32 %v5531_v50, %v3094_v57  ;;  %v3075_v14 = vmul.f32 %v3687_v41, %v5513_v34 }
 0x7a3   : > { %3132 = vst.msk [vmem:[%s5540_s20 + $0x68] sm:$0xff] %vm980_vm13, %v3116_v55  ;;  %v3097_v11 = vmul.f32 %v5525_v4, %v3076_v8 }
 0x7a4   : > { %3131 = vst.msk [vmem:[%s5540_s20 + $0x60] sm:$0xff] %vm980_vm13, %v3115_v24  ;;  %v3096_v6 = vmul.f32 %v5525_v4, %v3075_v14 }
 0x7a5   : > { %v3118_v19 = vadd.f32 %v5531_v50, %v3097_v11 }
 0x7a6   : > { %v3117_v16 = vadd.f32 %v5531_v50, %v3096_v6 }
 0x7a7   : > { %3134 = vst.msk [vmem:[%s5540_s20 + $0x78] sm:$0xff] %vm980_vm13, %v3118_v19 }
 0x7a8   : > { %3133 = vst.msk [vmem:[%s5540_s20 + $0x70] sm:$0xff] %vm980_vm13, %v3117_v16 }
 0x7a9 PF: > { %s20_s13 = sadd.s32 1, %s3694_s13  }
 0x7aa   : > { %p17_p4 = scmp.ge.s32.totalorder %s20_s13, 4  }
 0x7ac   :  { %19 = sbr.rel (!%p17_p4) target bundleno = 1 (0x1), region = 90 }

</bundles_post_ra>
